<compile_context>
chip_gen: v6e
topology: v6e:2x2x1
jax: 0.10.0
libtpu: 0.0.40
codegen_flags: <defaults>
</compile_context>

<pallas_src>
import functools
import math

import jax
import jax.numpy as jnp
import numpy as np
from jax import lax
from jax.experimental import pallas as pl
from jax.experimental.pallas import tpu as pltpu


# --------------------------------------------------------------------------------------------
# Hardware-aware helpers (trace-time only; no device kernels are launched here).
# --------------------------------------------------------------------------------------------

def _device_kind():
    try:
        return jax.devices()[0].device_kind.lower()
    except Exception:
        return ""


def _is_v5_like():
    kind = _device_kind()
    return any(tag in kind for tag in ("v2", "v3", "v4", "v5"))


def _vmem_capacity_bytes():
    cap = None
    try:
        cap = int(getattr(pltpu.get_tpu_info(), "vmem_capacity_bytes", 0)) or None
    except Exception:
        cap = None
    if cap is None:
        kind = _device_kind()
        cap = 64 * 1024 * 1024 if ("v7" in kind or "7x" in kind) else 128 * 1024 * 1024
    return cap


def _vmem_limit_bytes():
    cap = _vmem_capacity_bytes()
    limit = min(int(cap * 0.75), cap - 24 * 1024 * 1024)
    return max(limit, 32 * 1024 * 1024)


def _pick_tile_h(H, W, Cin, Cout, *, io_item, cd_item, sc_item, up_item, up_row_factor,
                 budget_bytes, row_align=1):
    """Largest row tile whose estimated per-step VMEM working set fits the budget."""
    Wp = W + 2

    def working_set(t):
        b = 2 * t * W * Cin * io_item                        # x stream (double-buffered)
        b += 2 * t * W * Cout * io_item                      # output stream (double-buffered)
        if up_row_factor > 0.0:
            b += 2 * max(1, int(round(t * up_row_factor))) * W * Cout * up_item
        b += 2 * (t + 2) * Wp * Cout * sc_item               # ping-pong halo scratch
        b += 2 * (Cin * Cout + 9 * Cout * Cout) * cd_item    # weights (double-buffered)
        b += t * W * Cout * 4                                # f32 conv accumulator
        b += t * W * 3 * Cout * cd_item                      # fused K=3*Cout patch operand
        b += t * W * Cout * 4                                # f32 lateral before the scratch store
        b += t * W * Cin * cd_item                           # cast x matmul operand
        return b

    row_align = max(1, int(row_align))
    step = (8 * row_align) // math.gcd(8, row_align)
    t = min(H, 512)
    if t >= step:
        t -= t % step
    while t > step and working_set(t) > budget_bytes:
        t -= step
    while t > 1 and working_set(t) > budget_bytes:           # cannot exit while over budget
        t = max(1, t // 2)
    t = max(1, min(t, H))
    for d in range(t, 0, -1):                                # prefer an exact divisor of H
        if H % d == 0:
            if 2 * d >= t and working_set(d) <= budget_bytes:
                t = d
            break
    return t


# --------------------------------------------------------------------------------------------
# Fused FPN kernel
#   grid = (N, nt + 1); the H axis is sequential ("arbitrary") and pipeline-skewed: step i computes
#   the lateral of row tile i and emits the 3x3-conv output of row tile i-1 using a one-row halo
#   carried across steps in two ping-pong zero-bordered VMEM buffers.
# --------------------------------------------------------------------------------------------

def _fpn_fused_kernel(*refs, up_mode, compute_dtype, img_h, rh, ragged):
    if up_mode is None:
        x_ref, wl_ref, bl_ref, wf_ref, bf_ref, o_ref, pad_ref = refs
        up_ref = None
    else:
        x_ref, wl_ref, bl_ref, wf_ref, bf_ref, up_ref, o_ref, pad_ref = refs

    _, T, W, Cin = x_ref.shape
    Cout = o_ref.shape[-1]
    sdt = pad_ref.dtype

    i = pl.program_id(1)
    nt = pl.num_programs(1) - 1            # number of real row tiles (grid has one skew step)
    cur = lax.rem(i, 2)                    # halo buffer written by this step's lateral
    prev = 1 - cur                         # halo buffer holding row tile i-1 (conv input)

    # --- once per batch: zero halo buffers (border cols + top halo) and the skewed-out block ----
    @pl.when(i == 0)
    def _init():
        pad_ref[...] = jnp.zeros(pad_ref.shape, sdt)
        # Block (n, 0) is mapped at i == 0 but only written at i == 1; zero it defensively so a
        # pipelining change can never flush uninitialized VMEM.
        o_ref[...] = jnp.zeros(o_ref.shape, o_ref.dtype)

    # --- phase A: lateral 1x1 conv + bias (+ skip) of row tile i -> pad_ref[cur, 1:T+1, 1:W+1] ---
    @pl.when(i < nt)
    def _lateral():
        xv = x_ref[0].astype(compute_dtype).reshape(T * W, Cin)
        lat = jnp.dot(xv, wl_ref[...], preferred_element_type=jnp.float32)
        lat = (lat + bl_ref[...]).reshape(T, W, Cout)
        if up_mode == "full":
            lat = lat + up_ref[0].astype(jnp.float32)
        elif up_mode == "coarse_rows":
            tc = T // rh
            u = up_ref[0].astype(jnp.float32)                 # (tc, W, Cout) coarse rows
            # nearest row expansion: leading-dim broadcast + reshape (layout dims untouched)
            u = jnp.broadcast_to(u[:, None, :, :], (tc, rh, W, Cout)).reshape(T, W, Cout)
            lat = lat + u
        if ragged:                                            # only emitted when H % T != 0
            row = i * T + lax.broadcasted_iota(jnp.int32, (T, W, Cout), 0)
            lat = jnp.where(row < img_h, lat, 0.0)
        pad_ref[cur, pl.ds(1, T), pl.ds(1, W), :] = lat.astype(sdt)

        @pl.when(i > 0)                                       # top halo = last real row of tile i-1
        def _():
            pad_ref[cur, 0, :, :] = pad_ref[prev, T, :, :]

    # --- phase B: 3x3 conv (stride 1, zero pad 1) of row tile i-1 -> output block i-1 -----------
    @pl.when(i > 0)
    def _conv():
        @pl.when(i < nt)                                      # bottom halo = first real row of tile i
        def _():
            pad_ref[prev, T + 1, :, :] = pad_ref[cur, 1, :, :]

        @pl.when(i == nt)                                     # zero padding below the image
        def _():
            pad_ref[prev, T + 1, :, :] = jnp.zeros((W + 2, Cout), sdt)

        # acc starts as the broadcast bias; 3 K-folded MXU matmuls (kx taps folded into K).
        acc = jnp.broadcast_to(bf_ref[...], (T * W, Cout)).astype(jnp.float32)
        for dy in range(3):                                   # row taps: free leading-dim slices
            parts = [pad_ref[prev, pl.ds(dy, T), pl.ds(dx, W), :].astype(compute_dtype)
                     for dx in range(3)]                      # column taps: static slices of the
            patch = jnp.concatenate(parts, axis=-1)           #   zero-bordered buffer (no masking)
            patch = patch.reshape(T * W, 3 * Cout)
            acc = acc + jnp.dot(patch, wf_ref[dy], preferred_element_type=jnp.float32)
        o_ref[...] = acc.reshape(1, T, W, Cout).astype(o_ref.dtype)


# --------------------------------------------------------------------------------------------
# JAX wrapper
# --------------------------------------------------------------------------------------------

def _nearest_upsample_nhwc(up_nhwc, H, W):
    # torch.nn.functional.interpolate(mode='nearest'): src = floor(dst * in / out)
    Hu, Wu = up_nhwc.shape[1], up_nhwc.shape[2]
    rows = jnp.minimum((jnp.arange(H) * Hu) // H, Hu - 1)
    cols = jnp.minimum((jnp.arange(W) * Wu) // W, Wu - 1)
    return up_nhwc[:, rows][:, :, cols]


def init_fpn_params(key, lateral_channel, out_channel, dtype=jnp.float32):
    k1, k2, k3, k4 = jax.random.split(key, 4)
    wl = jax.random.normal(k1, (lateral_channel, out_channel), dtype) * 0.1   # 1x1 conv (Cin, Cout)
    bl = jax.random.normal(k2, (out_channel,), dtype) * 0.1
    wf = jax.random.normal(k3, (3, 3, out_channel, out_channel), dtype) * 0.1  # 3x3 conv, HWIO
    bf = jax.random.normal(k4, (out_channel,), dtype) * 0.1
    return dict(wl=wl, bl=bl, wf=wf, bf=bf)


def fpn_block_forward(x, params, up_x=None, *, tile_h=None, compute_dtype=jnp.bfloat16,
                      scratch_dtype=None, layout="NCHW"):
    """FPNBlock forward.  layout="NCHW" (PyTorch-style, default) or "NHWC" (no wrapper transposes).
    x: (N, Cin, H, W) or (N, H, W, Cin); up_x: (N, Cout, Hu, Wu) / (N, Hu, Wu, Cout) or None."""
    assert layout in ("NCHW", "NHWC")
    wl, bl, wf, bf = params["wl"], params["bl"], params["wf"], params["bf"]
    # TODO(synk): writing NCHW output directly via an in-kernel tile transpose would remove the
    # remaining wrapper transposes for NCHW callers.
    x_nhwc = jnp.transpose(x, (0, 2, 3, 1)) if layout == "NCHW" else x
    N, H, W, Cin = x_nhwc.shape
    Cout = wl.shape[1]
    out_dtype = x_nhwc.dtype
    compute_dtype = jnp.dtype(compute_dtype)
    if scratch_dtype is None:
        # bf16 scratch halves VMEM footprint/traffic on v6e/v7x; keep f32 on v5-class parts
        # (no bf16 VPU datapath) or when the caller asked for an f32 compute path.
        scratch_dtype = (jnp.float32 if (compute_dtype == jnp.dtype(jnp.float32) or _is_v5_like())
                         else compute_dtype)
    scratch_dtype = jnp.dtype(scratch_dtype)

    has_up = up_x is not None
    up_nhwc = None
    rh = 1
    integer_ratio = False
    if has_up:
        up_nhwc = jnp.transpose(up_x, (0, 2, 3, 1)) if layout == "NCHW" else up_x
        Hu, Wu = up_nhwc.shape[1], up_nhwc.shape[2]
        integer_ratio = (H % Hu == 0) and (W % Wu == 0) and H >= Hu and W >= Wu
        rh = H // Hu if integer_ratio else 1

    io_item = jnp.dtype(out_dtype).itemsize
    cd_item = compute_dtype.itemsize
    sc_item = scratch_dtype.itemsize
    vmem_limit = _vmem_limit_bytes()

    if tile_h is None:
        up_row_factor = ((1.0 / rh) if integer_ratio else 1.0) if has_up else 0.0
        tile_h = _pick_tile_h(
            H, W, Cin, Cout, io_item=io_item, cd_item=cd_item, sc_item=sc_item,
            up_item=(jnp.dtype(up_nhwc.dtype).itemsize if has_up else 0),
            up_row_factor=up_row_factor, budget_bytes=int(vmem_limit * 0.8),
            row_align=(rh if integer_ratio else 1))
    T = max(1, min(int(tile_h), H))
    nt = int(pl.cdiv(H, T))
    ragged = (H % T) != 0

    # Skip-connection streaming mode: stream the coarse rows when the nearest map is an exact
    # integer repeat, expanding rows in-kernel.  Columns are pre-expanded once in XLA on the small
    # coarse-H tensor.  TODO(synk): expand columns in-kernel too (sublane repeat) for the full 4x.
    up_mode = None
    up_stream = None
    if has_up:
        if integer_ratio and (T % rh == 0):
            up_mode = "coarse_rows"
            cols = (np.arange(W) * up_nhwc.shape[2]) // W          # static nearest column map
            up_stream = up_nhwc[:, :, cols, :]                      # (N, Hu, W, Cout)
        else:
            up_mode = "full"
            up_stream = _nearest_upsample_nhwc(up_nhwc, H, W)       # (N, H, W, Cout)

    wf_fold = wf.reshape(3, 3 * Cout, Cout).astype(compute_dtype)   # kx taps folded into K

    kernel = functools.partial(
        _fpn_fused_kernel, up_mode=up_mode, compute_dtype=compute_dtype,
        img_h=H, rh=rh, ragged=ragged)

    in_specs = [
        pl.BlockSpec((1, T, W, Cin), lambda n, i: (n, jnp.minimum(i, nt - 1), 0, 0)),
        pl.BlockSpec((Cin, Cout), lambda n, i: (0, 0)),
        pl.BlockSpec((1, Cout), lambda n, i: (0, 0)),
        pl.BlockSpec((3, 3 * Cout, Cout), lambda n, i: (0, 0, 0)),
        pl.BlockSpec((1, Cout), lambda n, i: (0, 0)),
    ]
    inputs = [
        x_nhwc,
        wl.astype(compute_dtype),                              # MXU operands in compute dtype
        bl.reshape(1, Cout).astype(jnp.float32),               # biases / adds stay f32
        wf_fold,
        bf.reshape(1, Cout).astype(jnp.float32),
    ]
    if up_mode == "coarse_rows":
        tc = T // rh
        in_specs.append(pl.BlockSpec((1, tc, W, Cout),
                                     lambda n, i: (n, jnp.minimum(i, nt - 1), 0, 0)))
        inputs.append(up_stream)
    elif up_mode == "full":
        in_specs.append(pl.BlockSpec((1, T, W, Cout),
                                     lambda n, i: (n, jnp.minimum(i, nt - 1), 0, 0)))
        inputs.append(up_stream)

    # TODO(synk): when N == 1 on dual-TensorCore parts (v7x), add a parallel W split so both cores
    # are used; the current parallel axis is the batch only.
    out_nhwc = pl.pallas_call(
        kernel,
        out_shape=jax.ShapeDtypeStruct((N, H, W, Cout), out_dtype),
        grid=(N, nt + 1),                                      # +1 step: pipeline-skewed output
        in_specs=in_specs,
        out_specs=pl.BlockSpec((1, T, W, Cout),
                               lambda n, i: (n, jnp.maximum(i - 1, 0), 0, 0)),
        scratch_shapes=[
            pltpu.VMEM((2, T + 2, W + 2, Cout), scratch_dtype),    # ping-pong halo buffers
        ],
        compiler_params=pltpu.CompilerParams(
            dimension_semantics=("parallel", "arbitrary"),
            vmem_limit_bytes=vmem_limit,
        ),
    )(*inputs)
    return jnp.transpose(out_nhwc, (0, 3, 1, 2)) if layout == "NCHW" else out_nhwc


# Pure-JAX reference (correctness check only)
def _reference_forward(x_nchw, params, up_x_nchw=None):
    wl, bl, wf, bf = params["wl"], params["bl"], params["wf"], params["bf"]
    x = jnp.transpose(x_nchw, (0, 2, 3, 1))
    lateral = jnp.einsum("nhwc,co->nhwo", x, wl, precision=lax.Precision.HIGHEST) + bl
    if up_x_nchw is not None:
        up = jnp.transpose(up_x_nchw, (0, 2, 3, 1))
        lateral = lateral + _nearest_upsample_nhwc(up, lateral.shape[1], lateral.shape[2])
    out = lax.conv_general_dilated(
        lateral, wf, window_strides=(1, 1), padding="SAME",
        dimension_numbers=("NHWC", "HWIO", "NHWC"),
        precision=lax.Precision.HIGHEST) + bf
    return jnp.transpose(out, (0, 3, 1, 2))


if __name__ == "__main__":
    key = jax.random.PRNGKey(0)
    k_x, k_up, k_up2, k_p = jax.random.split(key, 4)

    N, Cin, Cout, H, W = 2, 4, 8, 16, 16
    x = jax.random.normal(k_x, (N, Cin, H, W), jnp.float32)                 # NCHW input
    up_x = jax.random.normal(k_up, (N, Cout, H // 2, W // 2), jnp.float32)  # 2x coarse skip
    up_x_odd = jax.random.normal(k_up2, (N, Cout, 5, 7), jnp.float32)       # non-integer ratio
    params = init_fpn_params(k_p, Cin, Cout)

    ref = _reference_forward(x, params, up_x)
    ref_no_up = _reference_forward(x, params, None)
    ref_odd = _reference_forward(x, params, up_x_odd)

    # Tolerances are sized so the tests pass whether or not the MXU runs f32 matmuls as bf16
    # passes under default precision; structural/indexing bugs produce O(0.1-1) errors.
    TOL32 = dict(rtol=1e-2, atol=1e-2)

    # f32 path, multiple row tiles (exercises the ping-pong halo carry + coarse-skip streaming)
    out = jax.block_until_ready(
        fpn_block_forward(x, params, up_x, tile_h=8, compute_dtype=jnp.float32))
    assert out.shape == (N, Cout, H, W)
    assert jnp.allclose(out, ref, **TOL32), "mismatch vs reference (f32 path)"

    # ragged row tiles (H % tile_h != 0) exercise the row-masking path
    out_rag = jax.block_until_ready(
        fpn_block_forward(x, params, up_x, tile_h=6, compute_dtype=jnp.float32))
    assert jnp.allclose(out_rag, ref, **TOL32), "mismatch vs reference (ragged)"

    # up_x=None path (specialized kernel variant with no skip input)
    out_nup = jax.block_until_ready(
        fpn_block_forward(x, params, None, tile_h=8, compute_dtype=jnp.float32))
    assert jnp.allclose(out_nup, ref_no_up, **TOL32), "mismatch vs reference (no skip)"

    # non-integer upsample ratio falls back to the full-resolution skip stream
    out_odd = jax.block_until_ready(
        fpn_block_forward(x, params, up_x_odd, tile_h=8, compute_dtype=jnp.float32))
    assert jnp.allclose(out_odd, ref_odd, **TOL32), "mismatch vs reference (non-integer ratio)"

    # default fast path: bf16 MXU operands, f32 accumulation, auto tile / scratch-dtype selection
    out_bf16 = jax.block_until_ready(fpn_block_forward(x, params, up_x))
    assert jnp.allclose(out_bf16, ref, rtol=3e-2, atol=3e-2), "mismatch vs reference (bf16 path)"

    print("KERNEL_OK")
</pallas_src>

<mosaic_0001>
module attributes {stable_mosaic.version = 11 : i64} {
  func.func @_fpn_fused_kernel(%arg0: i32, %arg1: i32, %arg2: memref<1x8x16x4xf32, #tpu.memory_space<vmem>>, %arg3: memref<4x8xf32, #tpu.memory_space<vmem>>, %arg4: memref<1x8xf32, #tpu.memory_space<vmem>>, %arg5: memref<3x24x8xf32, #tpu.memory_space<vmem>>, %arg6: memref<1x8xf32, #tpu.memory_space<vmem>>, %arg7: memref<1x4x16x8xf32, #tpu.memory_space<vmem>>, %arg8: memref<1x8x16x8xf32, #tpu.memory_space<vmem>>, %arg9: memref<2x10x18x8xf32, #tpu.memory_space<vmem>>) attributes {dimension_semantics = [#tpu.dimension_semantics<parallel>, #tpu.dimension_semantics<arbitrary>], iteration_bounds = array<i64: 2, 3>, scalar_prefetch = 0 : i64, scratch_operands = 1 : i64, tpu.core_type = #tpu.core_type<tc>, window_params = [{transform_indices = @transform_0, window_bounds = array<i64: 1, 8, 16, 4>}, {pipeline_mode = #tpu.pipeline_mode<synchronous>, transform_indices = @transform_1, window_bounds = array<i64: 4, 8>}, {pipeline_mode = #tpu.pipeline_mode<synchronous>, transform_indices = @transform_2, window_bounds = array<i64: 1, 8>}, {pipeline_mode = #tpu.pipeline_mode<synchronous>, transform_indices = @transform_3, window_bounds = array<i64: 3, 24, 8>}, {pipeline_mode = #tpu.pipeline_mode<synchronous>, transform_indices = @transform_4, window_bounds = array<i64: 1, 8>}, {transform_indices = @transform_5, window_bounds = array<i64: 1, 4, 16, 8>}, {transform_indices = @transform_6, window_bounds = array<i64: 1, 8, 16, 8>}]} {
    %c2_i32 = arith.constant 2 : i32
    %0 = arith.remsi %arg1, %c2_i32 : i32
    %c1_i32 = arith.constant 1 : i32
    %1 = arith.subi %c1_i32, %0 : i32
    %c0_i32 = arith.constant 0 : i32
    %2 = arith.cmpi eq, %arg1, %c0_i32 : i32
    %3 = arith.extui %2 : i1 to i32
    %c0_i32_0 = arith.constant 0 : i32
    %4 = arith.cmpi ne, %3, %c0_i32_0 : i32
    scf.if %4 {
      %cst = arith.constant 0.000000e+00 : f32
      %11 = vector.broadcast %cst : f32 to vector<2x10x18x8xf32>
      %c0 = arith.constant 0 : index
      %c0_5 = arith.constant 0 : index
      %c0_6 = arith.constant 0 : index
      %c0_7 = arith.constant 0 : index
      %12 = vector.load %arg9[%c0, %c0_5, %c0_6, %c0_7] : memref<2x10x18x8xf32, #tpu.memory_space<vmem>>, vector<2x10x18x8xf32>
      tpu.vector_store %arg9[%c0, %c0_5, %c0_6, %c0_7], %11 {strides = array<i32>} : memref<2x10x18x8xf32, #tpu.memory_space<vmem>>, vector<2x10x18x8xf32>,
      %cst_8 = arith.constant 0.000000e+00 : f32
      %13 = vector.broadcast %cst_8 : f32 to vector<1x8x16x8xf32>
      %c0_9 = arith.constant 0 : index
      %c0_10 = arith.constant 0 : index
      %c0_11 = arith.constant 0 : index
      %c0_12 = arith.constant 0 : index
      %14 = vector.load %arg8[%c0_9, %c0_10, %c0_11, %c0_12] : memref<1x8x16x8xf32, #tpu.memory_space<vmem>>, vector<1x8x16x8xf32>
      tpu.vector_store %arg8[%c0_9, %c0_10, %c0_11, %c0_12], %13 {strides = array<i32>} : memref<1x8x16x8xf32, #tpu.memory_space<vmem>>, vector<1x8x16x8xf32>,
    } else {
    }
    %c2_i32_1 = arith.constant 2 : i32
    %5 = arith.cmpi slt, %arg1, %c2_i32_1 : i32
    %6 = arith.extui %5 : i1 to i32
    %c0_i32_2 = arith.constant 0 : i32
    %7 = arith.cmpi ne, %6, %c0_i32_2 : i32
    scf.if %7 {
      %c0 = arith.constant 0 : index
      %c0_5 = arith.constant 0 : index
      %c0_6 = arith.constant 0 : index
      %c0_7 = arith.constant 0 : index
      %11 = vector.load %arg2[%c0, %c0_5, %c0_6, %c0_7] : memref<1x8x16x4xf32, #tpu.memory_space<vmem>>, vector<1x8x16x4xf32>
      %12 = vector.shape_cast %11 : vector<1x8x16x4xf32> to vector<8x16x4xf32>
      %13 = vector.shape_cast %12 : vector<8x16x4xf32> to vector<128x4xf32>
      %c0_8 = arith.constant 0 : index
      %c0_9 = arith.constant 0 : index
      %14 = vector.load %arg3[%c0_8, %c0_9] : memref<4x8xf32, #tpu.memory_space<vmem>>, vector<4x8xf32>
      %cst = arith.constant dense<0.000000e+00> : vector<128x8xf32>
      %15 = tpu.matmul %13, %14, %cst {dimension_numbers = #tpu.dot_dimension_numbers<[1], [0], [0], [1], [0, 0, 1, 1], [], []>} : vector<128x4xf32>, vector<4x8xf32>, vector<128x8xf32> -> vector<128x8xf32>
      %c0_10 = arith.constant 0 : index
      %c0_11 = arith.constant 0 : index
      %16 = vector.load %arg4[%c0_10, %c0_11] : memref<1x8xf32, #tpu.memory_space<vmem>>, vector<1x8xf32>
      %17 = vector.broadcast %16 : vector<1x8xf32> to vector<128x8xf32>
      %18 = arith.addf %15, %17 : vector<128x8xf32>
      %19 = vector.shape_cast %18 : vector<128x8xf32> to vector<8x16x8xf32>
      %c0_12 = arith.constant 0 : index
      %c0_13 = arith.constant 0 : index
      %c0_14 = arith.constant 0 : index
      %c0_15 = arith.constant 0 : index
      %20 = vector.load %arg7[%c0_12, %c0_13, %c0_14, %c0_15] : memref<1x4x16x8xf32, #tpu.memory_space<vmem>>, vector<1x4x16x8xf32>
      %21 = vector.shape_cast %20 : vector<1x4x16x8xf32> to vector<4x16x8xf32>
      %22 = vector.shape_cast %21 : vector<4x16x8xf32> to vector<4x1x16x8xf32>
      %23 = vector.shape_cast %22 : vector<4x1x16x8xf32> to vector<4x1x16x8xf32>
      %24 = vector.broadcast %23 : vector<4x1x16x8xf32> to vector<4x2x16x8xf32>
      %25 = vector.shape_cast %24 : vector<4x2x16x8xf32> to vector<8x16x8xf32>
      %26 = arith.addf %19, %25 : vector<8x16x8xf32>
      %27 = arith.index_cast %0 : i32 to index
      %c1 = arith.constant 1 : index
      %c1_16 = arith.constant 1 : index
      %c0_17 = arith.constant 0 : index
      %28 = vector.load %arg9[%27, %c1, %c1_16, %c0_17] : memref<2x10x18x8xf32, #tpu.memory_space<vmem>>, vector<1x8x16x8xf32>
      %29 = vector.shape_cast %28 : vector<1x8x16x8xf32> to vector<8x16x8xf32>
      %30 = vector.shape_cast %26 : vector<8x16x8xf32> to vector<1x8x16x8xf32>
      tpu.vector_store %arg9[%27, %c1, %c1_16, %c0_17], %30 {strides = array<i32>} : memref<2x10x18x8xf32, #tpu.memory_space<vmem>>, vector<1x8x16x8xf32>,
      %c0_i32_18 = arith.constant 0 : i32
      %31 = arith.cmpi sgt, %arg1, %c0_i32_18 : i32
      %32 = arith.extui %31 : i1 to i32
      %c0_i32_19 = arith.constant 0 : i32
      %33 = arith.cmpi ne, %32, %c0_i32_19 : i32
      scf.if %33 {
        %34 = arith.index_cast %1 : i32 to index
        %c8 = arith.constant 8 : index
        %c0_20 = arith.constant 0 : index
        %c0_21 = arith.constant 0 : index
        %35 = vector.load %arg9[%34, %c8, %c0_20, %c0_21] : memref<2x10x18x8xf32, #tpu.memory_space<vmem>>, vector<1x1x18x8xf32>
        %36 = vector.shape_cast %35 : vector<1x1x18x8xf32> to vector<18x8xf32>
        %37 = arith.index_cast %0 : i32 to index
        %c0_22 = arith.constant 0 : index
        %c0_23 = arith.constant 0 : index
        %c0_24 = arith.constant 0 : index
        %38 = vector.load %arg9[%37, %c0_22, %c0_23, %c0_24] : memref<2x10x18x8xf32, #tpu.memory_space<vmem>>, vector<1x1x18x8xf32>
        %39 = vector.shape_cast %38 : vector<1x1x18x8xf32> to vector<18x8xf32>
        %40 = vector.shape_cast %36 : vector<18x8xf32> to vector<1x1x18x8xf32>
        tpu.vector_store %arg9[%37, %c0_22, %c0_23, %c0_24], %40 {strides = array<i32>} : memref<2x10x18x8xf32, #tpu.memory_space<vmem>>, vector<1x1x18x8xf32>,
      } else {
      }
    } else {
    }
    %c0_i32_3 = arith.constant 0 : i32
    %8 = arith.cmpi sgt, %arg1, %c0_i32_3 : i32
    %9 = arith.extui %8 : i1 to i32
    %c0_i32_4 = arith.constant 0 : i32
    %10 = arith.cmpi ne, %9, %c0_i32_4 : i32
    scf.if %10 {
      %c2_i32_5 = arith.constant 2 : i32
      %11 = arith.cmpi slt, %arg1, %c2_i32_5 : i32
      %12 = arith.extui %11 : i1 to i32
      %c0_i32_6 = arith.constant 0 : i32
      %13 = arith.cmpi ne, %12, %c0_i32_6 : i32
      scf.if %13 {
        %67 = arith.index_cast %0 : i32 to index
        %c1_50 = arith.constant 1 : index
        %c0_51 = arith.constant 0 : index
        %c0_52 = arith.constant 0 : index
        %68 = vector.load %arg9[%67, %c1_50, %c0_51, %c0_52] : memref<2x10x18x8xf32, #tpu.memory_space<vmem>>, vector<1x1x18x8xf32>
        %69 = vector.shape_cast %68 : vector<1x1x18x8xf32> to vector<18x8xf32>
        %70 = arith.index_cast %1 : i32 to index
        %c9 = arith.constant 9 : index
        %c0_53 = arith.constant 0 : index
        %c0_54 = arith.constant 0 : index
        %71 = vector.load %arg9[%70, %c9, %c0_53, %c0_54] : memref<2x10x18x8xf32, #tpu.memory_space<vmem>>, vector<1x1x18x8xf32>
        %72 = vector.shape_cast %71 : vector<1x1x18x8xf32> to vector<18x8xf32>
        %73 = vector.shape_cast %69 : vector<18x8xf32> to vector<1x1x18x8xf32>
        tpu.vector_store %arg9[%70, %c9, %c0_53, %c0_54], %73 {strides = array<i32>} : memref<2x10x18x8xf32, #tpu.memory_space<vmem>>, vector<1x1x18x8xf32>,
      } else {
      }
      %c2_i32_7 = arith.constant 2 : i32
      %14 = arith.cmpi eq, %arg1, %c2_i32_7 : i32
      %15 = arith.extui %14 : i1 to i32
      %c0_i32_8 = arith.constant 0 : i32
      %16 = arith.cmpi ne, %15, %c0_i32_8 : i32
      scf.if %16 {
        %cst_50 = arith.constant 0.000000e+00 : f32
        %67 = vector.broadcast %cst_50 : f32 to vector<18x8xf32>
        %68 = arith.index_cast %1 : i32 to index
        %c9 = arith.constant 9 : index
        %c0_51 = arith.constant 0 : index
        %c0_52 = arith.constant 0 : index
        %69 = vector.load %arg9[%68, %c9, %c0_51, %c0_52] : memref<2x10x18x8xf32, #tpu.memory_space<vmem>>, vector<1x1x18x8xf32>
        %70 = vector.shape_cast %69 : vector<1x1x18x8xf32> to vector<18x8xf32>
        %71 = vector.shape_cast %67 : vector<18x8xf32> to vector<1x1x18x8xf32>
        tpu.vector_store %arg9[%68, %c9, %c0_51, %c0_52], %71 {strides = array<i32>} : memref<2x10x18x8xf32, #tpu.memory_space<vmem>>, vector<1x1x18x8xf32>,
      } else {
      }
      %c0 = arith.constant 0 : index
      %c0_9 = arith.constant 0 : index
      %17 = vector.load %arg6[%c0, %c0_9] : memref<1x8xf32, #tpu.memory_space<vmem>>, vector<1x8xf32>
      %18 = vector.shape_cast %17 : vector<1x8xf32> to vector<1x8xf32>
      %19 = vector.broadcast %18 : vector<1x8xf32> to vector<128x8xf32>
      %20 = arith.index_cast %1 : i32 to index
      %c0_10 = arith.constant 0 : index
      %c0_11 = arith.constant 0 : index
      %c0_12 = arith.constant 0 : index
      %21 = vector.load %arg9[%20, %c0_10, %c0_11, %c0_12] : memref<2x10x18x8xf32, #tpu.memory_space<vmem>>, vector<1x8x16x8xf32>
      %22 = vector.shape_cast %21 : vector<1x8x16x8xf32> to vector<8x16x8xf32>
      %23 = arith.index_cast %1 : i32 to index
      %c0_13 = arith.constant 0 : index
      %c1 = arith.constant 1 : index
      %c0_14 = arith.constant 0 : index
      %24 = vector.load %arg9[%23, %c0_13, %c1, %c0_14] : memref<2x10x18x8xf32, #tpu.memory_space<vmem>>, vector<1x8x16x8xf32>
      %25 = vector.shape_cast %24 : vector<1x8x16x8xf32> to vector<8x16x8xf32>
      %26 = arith.index_cast %1 : i32 to index
      %c0_15 = arith.constant 0 : index
      %c2 = arith.constant 2 : index
      %c0_16 = arith.constant 0 : index
      %27 = vector.load %arg9[%26, %c0_15, %c2, %c0_16] : memref<2x10x18x8xf32, #tpu.memory_space<vmem>>, vector<1x8x16x8xf32>
      %28 = vector.shape_cast %27 : vector<1x8x16x8xf32> to vector<8x16x8xf32>
      %29 = tpu.concatenate %22, %25, %28 in 2 : vector<8x16x8xf32>, vector<8x16x8xf32>, vector<8x16x8xf32> -> vector<8x16x24xf32>
      %30 = vector.shape_cast %29 : vector<8x16x24xf32> to vector<128x24xf32>
      %c0_17 = arith.constant 0 : index
      %c0_18 = arith.constant 0 : index
      %c0_19 = arith.constant 0 : index
      %31 = vector.load %arg5[%c0_17, %c0_18, %c0_19] : memref<3x24x8xf32, #tpu.memory_space<vmem>>, vector<1x24x8xf32>
      %32 = vector.shape_cast %31 : vector<1x24x8xf32> to vector<24x8xf32>
      %cst = arith.constant dense<0.000000e+00> : vector<128x8xf32>
      %33 = tpu.matmul %30, %32, %cst {dimension_numbers = #tpu.dot_dimension_numbers<[1], [0], [0], [1], [0, 0, 1, 1], [], []>} : vector<128x24xf32>, vector<24x8xf32>, vector<128x8xf32> -> vector<128x8xf32>
      %34 = arith.addf %19, %33 : vector<128x8xf32>
      %35 = arith.index_cast %1 : i32 to index
      %c1_20 = arith.constant 1 : index
      %c0_21 = arith.constant 0 : index
      %c0_22 = arith.constant 0 : index
      %36 = vector.load %arg9[%35, %c1_20, %c0_21, %c0_22] : memref<2x10x18x8xf32, #tpu.memory_space<vmem>>, vector<1x8x16x8xf32>
      %37 = vector.shape_cast %36 : vector<1x8x16x8xf32> to vector<8x16x8xf32>
      %38 = arith.index_cast %1 : i32 to index
      %c1_23 = arith.constant 1 : index
      %c1_24 = arith.constant 1 : index
      %c0_25 = arith.constant 0 : index
      %39 = vector.load %arg9[%38, %c1_23, %c1_24, %c0_25] : memref<2x10x18x8xf32, #tpu.memory_space<vmem>>, vector<1x8x16x8xf32>
      %40 = vector.shape_cast %39 : vector<1x8x16x8xf32> to vector<8x16x8xf32>
      %41 = arith.index_cast %1 : i32 to index
      %c1_26 = arith.constant 1 : index
      %c2_27 = arith.constant 2 : index
      %c0_28 = arith.constant 0 : index
      %42 = vector.load %arg9[%41, %c1_26, %c2_27, %c0_28] : memref<2x10x18x8xf32, #tpu.memory_space<vmem>>, vector<1x8x16x8xf32>
      %43 = vector.shape_cast %42 : vector<1x8x16x8xf32> to vector<8x16x8xf32>
      %44 = tpu.concatenate %37, %40, %43 in 2 : vector<8x16x8xf32>, vector<8x16x8xf32>, vector<8x16x8xf32> -> vector<8x16x24xf32>
      %45 = vector.shape_cast %44 : vector<8x16x24xf32> to vector<128x24xf32>
      %c1_29 = arith.constant 1 : index
      %c0_30 = arith.constant 0 : index
      %c0_31 = arith.constant 0 : index
      %46 = vector.load %arg5[%c1_29, %c0_30, %c0_31] : memref<3x24x8xf32, #tpu.memory_space<vmem>>, vector<1x24x8xf32>
      %47 = vector.shape_cast %46 : vector<1x24x8xf32> to vector<24x8xf32>
      %cst_32 = arith.constant dense<0.000000e+00> : vector<128x8xf32>
      %48 = tpu.matmul %45, %47, %cst_32 {dimension_numbers = #tpu.dot_dimension_numbers<[1], [0], [0], [1], [0, 0, 1, 1], [], []>} : vector<128x24xf32>, vector<24x8xf32>, vector<128x8xf32> -> vector<128x8xf32>
      %49 = arith.addf %34, %48 : vector<128x8xf32>
      %50 = arith.index_cast %1 : i32 to index
      %c2_33 = arith.constant 2 : index
      %c0_34 = arith.constant 0 : index
      %c0_35 = arith.constant 0 : index
      %51 = vector.load %arg9[%50, %c2_33, %c0_34, %c0_35] : memref<2x10x18x8xf32, #tpu.memory_space<vmem>>, vector<1x8x16x8xf32>
      %52 = vector.shape_cast %51 : vector<1x8x16x8xf32> to vector<8x16x8xf32>
      %53 = arith.index_cast %1 : i32 to index
      %c2_36 = arith.constant 2 : index
      %c1_37 = arith.constant 1 : index
      %c0_38 = arith.constant 0 : index
      %54 = vector.load %arg9[%53, %c2_36, %c1_37, %c0_38] : memref<2x10x18x8xf32, #tpu.memory_space<vmem>>, vector<1x8x16x8xf32>
      %55 = vector.shape_cast %54 : vector<1x8x16x8xf32> to vector<8x16x8xf32>
      %56 = arith.index_cast %1 : i32 to index
      %c2_39 = arith.constant 2 : index
      %c2_40 = arith.constant 2 : index
      %c0_41 = arith.constant 0 : index
      %57 = vector.load %arg9[%56, %c2_39, %c2_40, %c0_41] : memref<2x10x18x8xf32, #tpu.memory_space<vmem>>, vector<1x8x16x8xf32>
      %58 = vector.shape_cast %57 : vector<1x8x16x8xf32> to vector<8x16x8xf32>
      %59 = tpu.concatenate %52, %55, %58 in 2 : vector<8x16x8xf32>, vector<8x16x8xf32>, vector<8x16x8xf32> -> vector<8x16x24xf32>
      %60 = vector.shape_cast %59 : vector<8x16x24xf32> to vector<128x24xf32>
      %c2_42 = arith.constant 2 : index
      %c0_43 = arith.constant 0 : index
      %c0_44 = arith.constant 0 : index
      %61 = vector.load %arg5[%c2_42, %c0_43, %c0_44] : memref<3x24x8xf32, #tpu.memory_space<vmem>>, vector<1x24x8xf32>
      %62 = vector.shape_cast %61 : vector<1x24x8xf32> to vector<24x8xf32>
      %cst_45 = arith.constant dense<0.000000e+00> : vector<128x8xf32>
      %63 = tpu.matmul %60, %62, %cst_45 {dimension_numbers = #tpu.dot_dimension_numbers<[1], [0], [0], [1], [0, 0, 1, 1], [], []>} : vector<128x24xf32>, vector<24x8xf32>, vector<128x8xf32> -> vector<128x8xf32>
      %64 = arith.addf %49, %63 : vector<128x8xf32>
      %65 = vector.shape_cast %64 : vector<128x8xf32> to vector<1x8x16x8xf32>
      %c0_46 = arith.constant 0 : index
      %c0_47 = arith.constant 0 : index
      %c0_48 = arith.constant 0 : index
      %c0_49 = arith.constant 0 : index
      %66 = vector.load %arg8[%c0_46, %c0_47, %c0_48, %c0_49] : memref<1x8x16x8xf32, #tpu.memory_space<vmem>>, vector<1x8x16x8xf32>
      tpu.vector_store %arg8[%c0_46, %c0_47, %c0_48, %c0_49], %65 {strides = array<i32>} : memref<1x8x16x8xf32, #tpu.memory_space<vmem>>, vector<1x8x16x8xf32>,
    } else {
    }
    return
  }
  func.func @transform_0(%arg0: i32, %arg1: i32) -> (i32, i32, i32, i32) {
    %c1_i32 = arith.constant 1 : i32
    %0 = arith.minsi %arg1, %c1_i32 : i32
    %c0_i32 = arith.constant 0 : i32
    %c0_i32_0 = arith.constant 0 : i32
    %c0_i32_1 = arith.constant 0 : i32
    return %arg0, %0, %c0_i32, %c0_i32_0 : i32, i32, i32, i32
  }
  func.func @transform_1(%arg0: i32, %arg1: i32) -> (i32, i32) {
    %c0_i32 = arith.constant 0 : i32
    %c0_i32_0 = arith.constant 0 : i32
    %c0_i32_1 = arith.constant 0 : i32
    return %c0_i32, %c0_i32_0 : i32, i32
  }
  func.func @transform_2(%arg0: i32, %arg1: i32) -> (i32, i32) {
    %c0_i32 = arith.constant 0 : i32
    %c0_i32_0 = arith.constant 0 : i32
    %c0_i32_1 = arith.constant 0 : i32
    return %c0_i32, %c0_i32_0 : i32, i32
  }
  func.func @transform_3(%arg0: i32, %arg1: i32) -> (i32, i32, i32) {
    %c0_i32 = arith.constant 0 : i32
    %c0_i32_0 = arith.constant 0 : i32
    %c0_i32_1 = arith.constant 0 : i32
    %c0_i32_2 = arith.constant 0 : i32
    return %c0_i32, %c0_i32_0, %c0_i32_1 : i32, i32, i32
  }
  func.func @transform_4(%arg0: i32, %arg1: i32) -> (i32, i32) {
    %c0_i32 = arith.constant 0 : i32
    %c0_i32_0 = arith.constant 0 : i32
    %c0_i32_1 = arith.constant 0 : i32
    return %c0_i32, %c0_i32_0 : i32, i32
  }
  func.func @transform_5(%arg0: i32, %arg1: i32) -> (i32, i32, i32, i32) {
    %c1_i32 = arith.constant 1 : i32
    %0 = arith.minsi %arg1, %c1_i32 : i32
    %c0_i32 = arith.constant 0 : i32
    %c0_i32_0 = arith.constant 0 : i32
    %c0_i32_1 = arith.constant 0 : i32
    return %arg0, %0, %c0_i32, %c0_i32_0 : i32, i32, i32, i32
  }
  func.func @transform_6(%arg0: i32, %arg1: i32) -> (i32, i32, i32, i32) {
    %c1_i32 = arith.constant 1 : i32
    %0 = arith.subi %arg1, %c1_i32 : i32
    %c0_i32 = arith.constant 0 : i32
    %1 = arith.maxsi %0, %c0_i32 : i32
    %c0_i32_0 = arith.constant 0 : i32
    %c0_i32_1 = arith.constant 0 : i32
    %c0_i32_2 = arith.constant 0 : i32
    return %arg0, %1, %c0_i32_0, %c0_i32_1 : i32, i32, i32, i32
  }
}

</mosaic_0001>

<bundles_post_ra>
// kernel: tpu_custom_call.1
= control target key start
LH: loop header
LB: loop body
LE: loop exit
PB: predicated region body
PF: predicated region fallthrough
CT: control target
= control target key end

     0   :  { %s2780_s21 = smov 0   ;;  %s2782_s22 = smov 0   ;;  %s3707_s0 = inlined_call_operand.vmem [shape: f32[2,16,16,4], index: 0, kind: input, shape index: {}]   ;;  %s3708_s1 = inlined_call_operand.vmem [shape: f32[4,8], index: 1, kind: input, shape index: {}]   ;;  %s3709_s2 = inlined_call_operand.vmem [shape: f32[1,8], index: 2, kind: input, shape index: {}]   ;;  %s3710_s3 = inlined_call_operand.vmem [shape: f32[3,24,8], index: 3, kind: input, shape index: {}]   ;;  %s3711_s4 = inlined_call_operand.vmem [shape: f32[1,8], index: 4, kind: input, shape index: {}]   ;;  %s3712_s5 = inlined_call_operand.vmem [shape: f32[2,8,16,8], index: 5, kind: input, shape index: {}]   ;;  %s3713_s6 = inlined_call_operand.vmem [shape: f32[2,16,16,8], index: 6, kind: output, shape index: {}]  }
   0x1   :  { %s2784_s23 = smov 0   ;;  %s2786_s24 = smov 0  }
   0x2   :  { %s2788_s25 = smov 0  }
   0x3 LB: > { %s25_s26 = sadd.s32 1, %s2731_s23  ;;  %s28_s27 = sadd.s32 1, %s2735_s24  ;;  %s2739_s25 = sphi %s2788_s25, %s16_s25   ;;  %s2735_s24 = sphi %s2786_s24, %s3721_s24   ;;  %s2731_s23 = sphi %s2784_s23, %s3720_s23   ;;  %s2727_s22 = sphi %s2782_s22, %s3719_s22   ;;  %s2723_s21 = sphi %s2780_s21, %s3718_s21  }
   0x4   : > { %p26_p0 = scmp.ge.s32.totalorder %s25_s26, 3  ;;  %p2239_p1 = scmp.ge.s32.totalorder %s2739_s25, 1 }
   0x5   : > { %p274_p2 = scmp.lt.s32.totalorder %s2739_s25, 7 }
   0x6   : > { %s3723_s26 = smov (%p26_p0, %s25_s26), 0  ;;  %s3725_s27 = smov (!%p26_p0, %s28_s27), %s2735_s24 }
   0x7   : > { %3714 = sst [smem:[#allocation3_spill]] %s3723_s26  ;;  %p275_p3 = pnand %p2239_p1, %p274_p2 }
   0x8   : > { %p30_p4 = scmp.ge.s32.totalorder %s3725_s27, 2  ;;  %p331_p5 = scmp.lt.s32.totalorder (!%p275_p3), %s2723_s21, 1 }
   0x9   : > { %278 = sbr.rel (%p275_p3) target bundleno = 841 (0x349), region = 44  ;;  %p334_p6 = scmp.lt.s32.totalorder (!%p275_p3), %s2727_s22, 1 }
   0xa   : > { %s3727_s27 = smov (%p30_p4, %s3725_s27), 0  ;;  %s2248_s28 = sadd.s32 (!%p275_p3), 4294967295, %s2723_s21 }
   0xb   : > { %3715 = sst [smem:[#allocation4_spill]] %s3727_s27  ;;  %p378_p7 = scmp.lt.s32.totalorder (!%p275_p3), %s2723_s21, 0 }
   0xc   : > { %p362_p10 = scmp.gt.s32.totalorder (!%p275_p3), %s2248_s28, 0  ;;  %p2254_p12 = scmp.ne.s32.totalorder (!%p275_p3), %s2723_s21, 0 }
   0xe   : > { %s332_s29 = scalar_select %p331_p5, %s2723_s21, 1 }
   0xf   : > { %s3729_s22 = smov (!%p334_p6, %s2727_s22), 1  ;;  %s3735_s28 = smov (!%p362_p10, %s2248_s28), 0 }
  0x10   : > { %s2240_s30 = sshll.u32 %s332_s29, 3  ;;  %s2244_s7 = sshll.u32 %s332_s29, 2 }
  0x11   : > { %p336_p8 = scmp.lt.s32.totalorder %s2240_s30, 15  ;;  %s2242_s8 = sshll.u32 %s3729_s22, 5 }
  0x12   : > { %p351_p9 = scmp.lt.s32.totalorder %s2244_s7, 7  ;;  %s2246_s9 = sshll.u32 %s3729_s22, 4 }
  0x13   : > { %s3731_s30 = smov (!%p336_p8, %s2240_s30), 15  ;;  %s379_s22 = ssub.s32 0, %s2723_s21 }
  0x14   : > { %s3733_s7 = smov (!%p351_p9, %s2244_s7), 7  ;;  %s2241_s10 = sshll.u32 %s3731_s30, 1 }
  0x15   : > { %s340_s11 = sadd.s32 %s2242_s8, %s2241_s10  ;;  %s2245_s12 = sshll.u32 %s3733_s7, 1 }
  0x16   : > { %s2243_s13 = sshll.u32 %s340_s11, 3  ;;  %s355_s14 = sadd.s32 %s2246_s9, %s2245_s12 }
  0x17   : > { %s2823_s17 = scalar_lea.vmem %s3707_s0, %s2243_s13  ;;  %s2247_s18 = sshll.u32 %s355_s14, 3 }
  0x18   : > { %s2828_s29 = scalar_lea.vmem %s3712_s5, %s2247_s18  ;;  %s2253_s30 = smin.u32 %s2723_s21, %s379_s22 }
  0x19   : > { %s2249_s27 = sshll.u32 %s3735_s28, 3  ;;  %s381_s26 = sand.u32 1, %s2253_s30  }
  0x1a   : > { %p367_p11 = scmp.lt.s32.totalorder %s2249_s27, 15  ;;  %s382_s7 = ssub.s32 0, %s381_s26 }
  0x1b   : > { %s3737_s7 = smov (!%p378_p7, %s382_s7), %s381_s26 }
  0x1c   : > { %s3739_s27 = smov (!%p367_p11, %s2249_s27), 15  ;;  %s2837_s9 = ssub.s32 1, %s3737_s7 }
  0x1d   : > { %s2250_s10 = sshll.u32 %s3739_s27, 1  ;;  %388 = sbr.rel (%p2254_p12) target bundleno = 73 (0x49), region = 48 }
  0x1e   : > { %s371_s11 = sadd.s32 %s2250_s10, %s2242_s8 }
  0x1f   : > { %s2252_s12 = sshll.u32 %s371_s11, 3 }
  0x20   : > { %s2842_s15 = scalar_lea.vmem %s3713_s6, %s2252_s12 }
  0x22   : > { %vm389_vm0 = vcmask 64512   ;;  %vm392_vm1 = vcmask 58368   ;;  %v2741_v0 = vmov 0.0  }
  0x23   : > { %390 = vst.msk [vmem:[#allocation2] sm:$0xff] %vm389_vm0, %v2741_v0  ;;  %391 = vst.msk [vmem:[#allocation2 + $0x8] sm:$0xff] %vm389_vm0, %v2741_v0 }
  0x24   : > { %394 = vst.msk [vmem:[#allocation2 + $0x18] sm:$0xff] %vm389_vm0, %v2741_v0  ;;  %395 = vst.msk [vmem:[#allocation2 + $0x20] sm:$0xff] %vm389_vm0, %v2741_v0 }
  0x25   : > { %397 = vst.msk [vmem:[#allocation2 + $0x30] sm:$0xff] %vm389_vm0, %v2741_v0  ;;  %398 = vst.msk [vmem:[#allocation2 + $0x38] sm:$0xff] %vm389_vm0, %v2741_v0 }
  0x26   : > { %400 = vst.msk [vmem:[#allocation2 + $0x48] sm:$0xff] %vm389_vm0, %v2741_v0  ;;  %401 = vst.msk [vmem:[#allocation2 + $0x50] sm:$0xff] %vm389_vm0, %v2741_v0 }
  0x27   : > { %403 = vst.msk [vmem:[#allocation2 + $0x60] sm:$0xff] %vm389_vm0, %v2741_v0  ;;  %404 = vst.msk [vmem:[#allocation2 + $0x68] sm:$0xff] %vm389_vm0, %v2741_v0 }
  0x28   : > { %406 = vst.msk [vmem:[#allocation2 + $0x78] sm:$0xff] %vm389_vm0, %v2741_v0  ;;  %407 = vst.msk [vmem:[#allocation2 + $0x80] sm:$0xff] %vm389_vm0, %v2741_v0 }
  0x29   : > { %409 = vst.msk [vmem:[#allocation2 + $0x90] sm:$0xff] %vm389_vm0, %v2741_v0  ;;  %410 = vst.msk [vmem:[#allocation2 + $0x98] sm:$0xff] %vm389_vm0, %v2741_v0 }
  0x2a   : > { %412 = vst.msk [vmem:[#allocation2 + $0xa8] sm:$0xff] %vm389_vm0, %v2741_v0  ;;  %413 = vst.msk [vmem:[#allocation2 + $0xb0] sm:$0xff] %vm389_vm0, %v2741_v0 }
  0x2b   : > { %415 = vst.msk [vmem:[#allocation2 + $0xc0] sm:$0xff] %vm389_vm0, %v2741_v0  ;;  %416 = vst.msk [vmem:[#allocation2 + $0xc8] sm:$0xff] %vm389_vm0, %v2741_v0 }
  0x2c   : > { %418 = vst.msk [vmem:[#allocation2 + $0xd8] sm:$0xff] %vm389_vm0, %v2741_v0  ;;  %419 = vst.msk [vmem:[#allocation2 + $0xe0] sm:$0xff] %vm389_vm0, %v2741_v0 }
  0x2d   : > { %421 = vst.msk [vmem:[#allocation2 + $0xf0] sm:$0xff] %vm389_vm0, %v2741_v0  ;;  %422 = vst.msk [vmem:[#allocation2 + $0xf8] sm:$0xff] %vm389_vm0, %v2741_v0 }
  0x2e   : > { %424 = vst.msk [vmem:[#allocation2 + $0x108] sm:$0xff] %vm389_vm0, %v2741_v0  ;;  %425 = vst.msk [vmem:[#allocation2 + $0x110] sm:$0xff] %vm389_vm0, %v2741_v0 }
  0x2f   : > { %427 = vst.msk [vmem:[#allocation2 + $0x120] sm:$0xff] %vm389_vm0, %v2741_v0  ;;  %428 = vst.msk [vmem:[#allocation2 + $0x128] sm:$0xff] %vm389_vm0, %v2741_v0 }
  0x30   : > { %430 = vst.msk [vmem:[#allocation2 + $0x138] sm:$0xff] %vm389_vm0, %v2741_v0  ;;  %431 = vst.msk [vmem:[#allocation2 + $0x140] sm:$0xff] %vm389_vm0, %v2741_v0 }
  0x31   : > { %433 = vst.msk [vmem:[#allocation2 + $0x150] sm:$0xff] %vm389_vm0, %v2741_v0  ;;  %434 = vst.msk [vmem:[#allocation2 + $0x158] sm:$0xff] %vm389_vm0, %v2741_v0 }
  0x32   : > { %436 = vst.msk [vmem:[#allocation2 + $0x168] sm:$0xff] %vm389_vm0, %v2741_v0  ;;  %437 = vst.msk [vmem:[#allocation2 + $0x170] sm:$0xff] %vm389_vm0, %v2741_v0 }
  0x33   : > { %439 = vst.msk [vmem:[#allocation2 + $0x180] sm:$0xff] %vm389_vm0, %v2741_v0  ;;  %440 = vst.msk [vmem:[#allocation2 + $0x188] sm:$0xff] %vm389_vm0, %v2741_v0 }
  0x34   : > { %442 = vst.msk [vmem:[#allocation2 + $0x198] sm:$0xff] %vm389_vm0, %v2741_v0  ;;  %443 = vst.msk [vmem:[#allocation2 + $0x1a0] sm:$0xff] %vm389_vm0, %v2741_v0 }
  0x35   : > { %445 = vst.msk [vmem:[#allocation2 + $0x1b0] sm:$0xff] %vm389_vm0, %v2741_v0  ;;  %446 = vst.msk [vmem:[#allocation2 + $0x1b8] sm:$0xff] %vm389_vm0, %v2741_v0 }
  0x36   : > { %448 = vst.msk [vmem:[#allocation2 + $0x1c8] sm:$0xff] %vm389_vm0, %v2741_v0  ;;  %449 = vst.msk [vmem:[#allocation2 + $0x1d0] sm:$0xff] %vm389_vm0, %v2741_v0 }
  0x37   : > { %451 = vst.msk [vmem:[%s2842_s15] sm:$0xff] %vm389_vm0, %v2741_v0  ;;  %452 = vst.msk [vmem:[%s2842_s15 + $0x8] sm:$0xff] %vm389_vm0, %v2741_v0 }
  0x38   : > { %453 = vst.msk [vmem:[%s2842_s15 + $0x10] sm:$0xff] %vm389_vm0, %v2741_v0  ;;  %454 = vst.msk [vmem:[%s2842_s15 + $0x18] sm:$0xff] %vm389_vm0, %v2741_v0 }
  0x39   : > { %455 = vst.msk [vmem:[%s2842_s15 + $0x20] sm:$0xff] %vm389_vm0, %v2741_v0  ;;  %456 = vst.msk [vmem:[%s2842_s15 + $0x28] sm:$0xff] %vm389_vm0, %v2741_v0 }
  0x3a   : > { %457 = vst.msk [vmem:[%s2842_s15 + $0x30] sm:$0xff] %vm389_vm0, %v2741_v0  ;;  %458 = vst.msk [vmem:[%s2842_s15 + $0x38] sm:$0xff] %vm389_vm0, %v2741_v0 }
  0x3b   : > { %459 = vst.msk [vmem:[%s2842_s15 + $0x40] sm:$0xff] %vm389_vm0, %v2741_v0  ;;  %460 = vst.msk [vmem:[%s2842_s15 + $0x48] sm:$0xff] %vm389_vm0, %v2741_v0 }
  0x3c   : > { %461 = vst.msk [vmem:[%s2842_s15 + $0x50] sm:$0xff] %vm389_vm0, %v2741_v0  ;;  %462 = vst.msk [vmem:[%s2842_s15 + $0x58] sm:$0xff] %vm389_vm0, %v2741_v0 }
  0x3d   : > { %463 = vst.msk [vmem:[%s2842_s15 + $0x60] sm:$0xff] %vm389_vm0, %v2741_v0  ;;  %464 = vst.msk [vmem:[%s2842_s15 + $0x68] sm:$0xff] %vm389_vm0, %v2741_v0 }
  0x3e   : > { %465 = vst.msk [vmem:[%s2842_s15 + $0x70] sm:$0xff] %vm389_vm0, %v2741_v0  ;;  %466 = vst.msk [vmem:[%s2842_s15 + $0x78] sm:$0xff] %vm389_vm0, %v2741_v0 }
  0x3f   : > { %393 = vst.msk [vmem:[#allocation2 + $0x10] sm:$0x3] %vm392_vm1, %v2741_v0  ;;  %396 = vst.msk [vmem:[#allocation2 + $0x28] sm:$0x3] %vm392_vm1, %v2741_v0 }
  0x40   : > { %399 = vst.msk [vmem:[#allocation2 + $0x40] sm:$0x3] %vm392_vm1, %v2741_v0  ;;  %402 = vst.msk [vmem:[#allocation2 + $0x58] sm:$0x3] %vm392_vm1, %v2741_v0 }
  0x41   : > { %405 = vst.msk [vmem:[#allocation2 + $0x70] sm:$0x3] %vm392_vm1, %v2741_v0  ;;  %408 = vst.msk [vmem:[#allocation2 + $0x88] sm:$0x3] %vm392_vm1, %v2741_v0 }
  0x42   : > { %411 = vst.msk [vmem:[#allocation2 + $0xa0] sm:$0x3] %vm392_vm1, %v2741_v0  ;;  %414 = vst.msk [vmem:[#allocation2 + $0xb8] sm:$0x3] %vm392_vm1, %v2741_v0 }
  0x43   : > { %417 = vst.msk [vmem:[#allocation2 + $0xd0] sm:$0x3] %vm392_vm1, %v2741_v0  ;;  %420 = vst.msk [vmem:[#allocation2 + $0xe8] sm:$0x3] %vm392_vm1, %v2741_v0 }
  0x44   : > { %423 = vst.msk [vmem:[#allocation2 + $0x100] sm:$0x3] %vm392_vm1, %v2741_v0  ;;  %426 = vst.msk [vmem:[#allocation2 + $0x118] sm:$0x3] %vm392_vm1, %v2741_v0 }
  0x45   : > { %429 = vst.msk [vmem:[#allocation2 + $0x130] sm:$0x3] %vm392_vm1, %v2741_v0  ;;  %432 = vst.msk [vmem:[#allocation2 + $0x148] sm:$0x3] %vm392_vm1, %v2741_v0 }
  0x46   : > { %435 = vst.msk [vmem:[#allocation2 + $0x160] sm:$0x3] %vm392_vm1, %v2741_v0  ;;  %438 = vst.msk [vmem:[#allocation2 + $0x178] sm:$0x3] %vm392_vm1, %v2741_v0 }
  0x47   : > { %441 = vst.msk [vmem:[#allocation2 + $0x190] sm:$0x3] %vm392_vm1, %v2741_v0  ;;  %444 = vst.msk [vmem:[#allocation2 + $0x1a8] sm:$0x3] %vm392_vm1, %v2741_v0 }
  0x48   : > { %447 = vst.msk [vmem:[#allocation2 + $0x1c0] sm:$0x3] %vm392_vm1, %v2741_v0  ;;  %450 = vst.msk [vmem:[#allocation2 + $0x1d8] sm:$0x3] %vm392_vm1, %v2741_v0 }
  0x49 PF: > { %p2255_p13 = scmp.ge.s32.totalorder %s2723_s21, 2 }
  0x4a   : > { %s717_s16 = smul.u32 (!%p2255_p13), 240, %s3737_s7  ;;  %p2290_p0 = scmp.le.s32.totalorder (!%p2255_p13), %s2723_s21, 0 }
  0x4b   : > { %470 = sbr.rel (%p2255_p13) target bundleno = 305 (0x131), region = 52 }
  0x50   : > { %v487_v1 = vld [vmem:[%s3708_s1] sm:$0xf]  ;;  %vm544_vm2 = vcmask 1043456   ;;  %vm495_vm3 = vcmask 31744   ;;  %v472_v4 = vld [vmem:[%s2823_s17 + $0x8] sm:$0xff]  ;;  %v473_v6 = vld [vmem:[%s2823_s17 + $0x10] sm:$0xff] }
  0x51   : > { %v471_v2 = vld [vmem:[%s2823_s17] sm:$0xff]  ;;  %2533 = vmatprep.subr.msk.mxu0 %vm544_vm2, %v487_v1  ;;  %2649 = vmatprep.subr.msk.mxu1 %vm544_vm2, %v487_v1  ;;  %v480_v5 = vld [vmem:[%s2823_s17 + $0x48] sm:$0xff]  ;;  %v481_v7 = vld [vmem:[%s2823_s17 + $0x50] sm:$0xff]  ;;  %vm720_vm4 = vcmask 64512   ;;  %s2163_s18 = smul.u32 (!%p2290_p0), 240, %s2837_s9 }
  0x52   : > { %v479_v3 = vld [vmem:[%s2823_s17 + $0x40] sm:$0xff]  ;;  %2534 = vmatpush3.msk.msra.mxu0 %vm544_vm2, %v487_v1  ;;  %2650 = vmatpush3.msk.msra.mxu1 %vm544_vm2, %v487_v1  ;;  %v474_v8 = vld [vmem:[%s2823_s17 + $0x18] sm:$0xff]  ;;  %v476_v12 = vld [vmem:[%s2823_s17 + $0x28] sm:$0xff] }
  0x53   : > { %2535 = vmatprep.mubr.msk.f32.mxu0 %vm495_vm3, %v471_v2  ;;  %2547 = vmatprep.mubr.msk.f32.mxu1 %vm495_vm3, %v479_v3  ;;  %v482_v9 = vld [vmem:[%s2823_s17 + $0x58] sm:$0xff]  ;;  %v475_v10 = vld [vmem:[%s2823_s17 + $0x20] sm:$0xff]  ;;  %v484_v13 = vld [vmem:[%s2823_s17 + $0x68] sm:$0xff]  ;;  %s2164_s19 = scalar_lea.vmem (!%p2290_p0), [#allocation2], %s2163_s18 }
  0x54   : > { %2536 = vmatmul.mubr.msk.f32.vlgmr.msra.gmra.mxu0 %vm495_vm3, %v472_v4  ;;  %2548 = vmatmul.mubr.msk.f32.vlgmr.msra.gmra.mxu1 %vm495_vm3, %v480_v5  ;;  %v483_v11 = vld [vmem:[%s2823_s17 + $0x60] sm:$0xff]  ;;  %v477_v14 = vld [vmem:[%s2823_s17 + $0x30] sm:$0xff]  ;;  %v478_v16 = vld [vmem:[%s2823_s17 + $0x38] sm:$0xff] }
  0x55   : > { %2538 = vmatprep.mubr.msk.f32.mxu0 %vm495_vm3, %v473_v6  ;;  %2550 = vmatprep.mubr.msk.f32.mxu1 %vm495_vm3, %v481_v7  ;;  %v485_v15 = vld [vmem:[%s2823_s17 + $0x70] sm:$0xff]  ;;  %v486_v17 = vld [vmem:[%s2823_s17 + $0x78] sm:$0xff]  ;;  %v3054_v18 = vld [vmem:[%s3709_s2] ss:$0 sm:$0xff]  ;;  %s3065_s17 = scalar_lea.vmem [#allocation2], %s717_s16 }
  0x56   : > { %v694_v20 = vld [vmem:[%s2828_s29 + $0x8] sm:$0xff]  ;;  %v693_v26 = vld [vmem:[%s2828_s29] sm:$0xff]  ;;  %v696_v46 = vld [vmem:[%s2828_s29 + $0x18] sm:$0xff] }
  0x57   : > { %v698_v22 = vld [vmem:[%s2828_s29 + $0x28] sm:$0xff]  ;;  %v697_v28 = vld [vmem:[%s2828_s29 + $0x20] sm:$0xff]  ;;  %v700_v48 = vld [vmem:[%s2828_s29 + $0x38] sm:$0xff] }
  0x58   : > { %2539 = vmatmul.mubr.msk.f32.gmra.mxu0 %vm495_vm3, %v474_v8  ;;  %2551 = vmatmul.mubr.msk.f32.gmra.mxu1 %vm495_vm3, %v482_v9  ;;  %v695_v54 = vld [vmem:[%s2828_s29 + $0x10] sm:$0xff] }
  0x59   : > { %2541 = vmatprep.mubr.msk.f32.mxu0 %vm495_vm3, %v475_v10  ;;  %2553 = vmatprep.mubr.msk.f32.mxu1 %vm495_vm3, %v483_v11  ;;  %v699_v56 = vld [vmem:[%s2828_s29 + $0x30] sm:$0xff] }
  0x5c   : > { %2542 = vmatmul.mubr.msk.f32.gmra.mxu0 %vm495_vm3, %v476_v12  ;;  %2554 = vmatmul.mubr.msk.f32.gmra.mxu1 %vm495_vm3, %v484_v13 }
  0x5d   : > { %2544 = vmatprep.mubr.msk.f32.mxu0 %vm495_vm3, %v477_v14  ;;  %2556 = vmatprep.mubr.msk.f32.mxu1 %vm495_vm3, %v485_v15 }
  0x60   : > { %2545 = vmatmul.mubr.msk.f32.gmra.mxu0 %vm495_vm3, %v478_v16  ;;  %2557 = vmatmul.mubr.msk.f32.gmra.mxu1 %vm495_vm3, %v486_v17 }
 0x114   : > { %v2537_v19 = vpop.f32.mrf.mxu0  ;;  %v2549_v21 = vpop.f32.mrf.mxu1 }
 0x115   : > { %v620_v23 = vadd.f32 %v2537_v19, %v3054_v18  ;;  %v660_v24 = vadd.f32 %v2549_v21, %v3054_v18 }
 0x116   : > { %v614_v25 = vpop.f32.mrf.mxu0  ;;  %v654_v27 = vpop.f32.mrf.mxu1 }
 0x117   : > { %v702_v29 = vadd.f32 %v694_v20, %v620_v23  ;;  %v710_v30 = vadd.f32 %v698_v22, %v660_v24  ;;  %v615_v31 = vadd.f32 %v3054_v18, %v614_v25  ;;  %v655_v32 = vadd.f32 %v3054_v18, %v654_v27 }
 0x118   : > { %v2540_v33 = vpop.f32.mrf.mxu0  ;;  %v2552_v34 = vpop.f32.mrf.mxu1 }
 0x119   : > { %2275 = vst.msk [vmem:[%s3065_s17 + $0x21] sm:$0xff] %vm720_vm4, %v702_v29  ;;  %2283 = vst.msk [vmem:[%s3065_s17 + $0x81] sm:$0xff] %vm720_vm4, %v710_v30  ;;  %v701_v35 = vadd.f32 %v693_v26, %v615_v31  ;;  %v709_v36 = vadd.f32 %v697_v28, %v655_v32  ;;  %v630_v37 = vadd.f32 %v2540_v33, %v3054_v18 }
 0x11a   : > { %v670_v38 = vadd.f32 %v2552_v34, %v3054_v18  ;;  %v624_v39 = vpop.f32.mrf.mxu0  ;;  %v664_v40 = vpop.f32.mrf.mxu1 }
 0x11b   : > { %2274 = vst.msk [vmem:[%s3065_s17 + $0x19] sm:$0xff] %vm720_vm4, %v701_v35  ;;  %2282 = vst.msk [vmem:[%s3065_s17 + $0x79] sm:$0xff] %vm720_vm4, %v709_v36  ;;  %v704_v41 = vadd.f32 %v694_v20, %v630_v37  ;;  %v625_v43 = vadd.f32 %v3054_v18, %v624_v39  ;;  %v665_v44 = vadd.f32 %v3054_v18, %v664_v40 }
 0x11c   : > { %v712_v42 = vadd.f32 %v698_v22, %v670_v38  ;;  %v2543_v45 = vpop.f32.mrf.mxu0  ;;  %v2555_v47 = vpop.f32.mrf.mxu1 }
 0x11d   : > { %2277 = vst.msk [vmem:[%s3065_s17 + $0x39] sm:$0xff] %vm720_vm4, %v704_v41  ;;  %v703_v49 = vadd.f32 %v693_v26, %v625_v43  ;;  %v711_v50 = vadd.f32 %v697_v28, %v665_v44  ;;  %v640_v51 = vadd.f32 %v2543_v45, %v3054_v18  ;;  %v680_v52 = vadd.f32 %v2555_v47, %v3054_v18 }
 0x11e   : > { %2285 = vst.msk [vmem:[%s3065_s17 + $0x99] sm:$0xff] %vm720_vm4, %v712_v42  ;;  %v634_v53 = vpop.f32.mrf.mxu0  ;;  %v674_v55 = vpop.f32.mrf.mxu1 }
 0x11f   : > { %2276 = vst.msk [vmem:[%s3065_s17 + $0x31] sm:$0xff] %vm720_vm4, %v703_v49  ;;  %2284 = vst.msk [vmem:[%s3065_s17 + $0x91] sm:$0xff] %vm720_vm4, %v711_v50  ;;  %v706_v57 = vadd.f32 %v696_v46, %v640_v51  ;;  %v714_v58 = vadd.f32 %v700_v48, %v680_v52  ;;  %v635_v59 = vadd.f32 %v3054_v18, %v634_v53 }
 0x120   : > { %v675_v60 = vadd.f32 %v3054_v18, %v674_v55  ;;  %v2546_v61 = vpop.f32.mrf.mxu0  ;;  %v2558_v62 = vpop.f32.mrf.mxu1 }
 0x121   : > { %2279 = vst.msk [vmem:[%s3065_s17 + $0x51] sm:$0xff] %vm720_vm4, %v706_v57  ;;  %2287 = vst.msk [vmem:[%s3065_s17 + $0xb1] sm:$0xff] %vm720_vm4, %v714_v58  ;;  %v705_v63 = vadd.f32 %v695_v54, %v635_v59  ;;  %v650_v1 = vadd.f32 %v2546_v61, %v3054_v18  ;;  %v690_v2 = vadd.f32 %v2558_v62, %v3054_v18 }
 0x122   : > { %v713_v0 = vadd.f32 %v699_v56, %v675_v60  ;;  %v644_v3 = vpop.f32.mrf.mxu0  ;;  %v684_v4 = vpop.f32.mrf.mxu1 }
 0x123   : > { %2278 = vst.msk [vmem:[%s3065_s17 + $0x49] sm:$0xff] %vm720_vm4, %v705_v63  ;;  %v708_v5 = vadd.f32 %v696_v46, %v650_v1  ;;  %v716_v6 = vadd.f32 %v700_v48, %v690_v2  ;;  %v645_v7 = vadd.f32 %v3054_v18, %v644_v3  ;;  %v685_v8 = vadd.f32 %v3054_v18, %v684_v4  ;;  %740 = sbr.rel (%p2290_p0) target bundleno = 305 (0x131), region = 56 }
 0x124   : > { %2286 = vst.msk [vmem:[%s3065_s17 + $0xa9] sm:$0xff] %vm720_vm4, %v713_v0 }
 0x125   : > { %2281 = vst.msk [vmem:[%s3065_s17 + $0x69] sm:$0xff] %vm720_vm4, %v708_v5  ;;  %2289 = vst.msk [vmem:[%s3065_s17 + $0xc9] sm:$0xff] %vm720_vm4, %v716_v6  ;;  %v707_v9 = vadd.f32 %v695_v54, %v645_v7  ;;  %v715_v10 = vadd.f32 %v699_v56, %v685_v8 }
 0x127   : > { %2280 = vst.msk [vmem:[%s3065_s17 + $0x61] sm:$0xff] %vm720_vm4, %v707_v9  ;;  %2288 = vst.msk [vmem:[%s3065_s17 + $0xc1] sm:$0xff] %vm720_vm4, %v715_v10 }
 0x128   : > { %vm750_vm5 = vcmask 58368  }
 0x12e   : > { %v2291_v11 = vld [vmem:[%s2164_s19 + $0xc0] sm:$0xff]  ;;  %v2292_v12 = vld [vmem:[%s2164_s19 + $0xc8] sm:$0xff]  ;;  %v2293_v13 = vld [vmem:[%s2164_s19 + $0xd0] sm:$0x3] }
 0x12f   : > { %748 = vst.msk [vmem:[%s3065_s17] sm:$0xff] %vm720_vm4, %v2291_v11  ;;  %749 = vst.msk [vmem:[%s3065_s17 + $0x8] sm:$0xff] %vm720_vm4, %v2292_v12 }
 0x130   : > { %751 = vst.msk [vmem:[%s3065_s17 + $0x10] sm:$0x3] %vm750_vm5, %v2293_v13 }
 0x131 PF: > { %p2294_p1 = scmp.le.s32.totalorder %s2723_s21, 0 }
 0x133   : > { %755 = sbr.rel (%p2294_p1) target bundleno = 841 (0x349), region = 60 }
 0x138   : > { %758 = sbr.rel (%p2255_p13) target bundleno = 320 (0x140), region = 64 }
 0x139   : > { %s2168_s20 = smul.u32 (!%p2255_p13), 240, %s3737_s7 }
 0x13a   : > { %s2171_s29 = smul.u32 (!%p2255_p13), 240, %s2837_s9 }
 0x13b   : > { %s2169_s22 = scalar_lea.vmem (!%p2255_p13), [#allocation2], %s2168_s20 }
 0x13c   : > { %s2172_s30 = scalar_lea.vmem (!%p2255_p13), [#allocation2], %s2171_s29 }
 0x13d   : > { %vm768_vm6 = vcmask 64512   ;;  %vm771_vm7 = vcmask 58368   ;;  %v2296_v14 = vld [vmem:[%s2169_s22 + $0x18] sm:$0xff]  ;;  %v2297_v15 = vld [vmem:[%s2169_s22 + $0x20] sm:$0xff]  ;;  %v2298_v16 = vld [vmem:[%s2169_s22 + $0x28] sm:$0x3] }
 0x13e   : > { %2299 = vst.msk [vmem:[%s2172_s30 + $0xd8] sm:$0xff] %vm768_vm6, %v2296_v14  ;;  %2300 = vst.msk [vmem:[%s2172_s30 + $0xe0] sm:$0xff] %vm768_vm6, %v2297_v15 }
 0x13f   : > { %2301 = vst.msk [vmem:[%s2172_s30 + $0xe8] sm:$0x3] %vm771_vm7, %v2298_v16 }
 0x140 PF: > { %p2302_p2 = scmp.ne.s32.totalorder %s2723_s21, 2 }
 0x141   : > { %s2174_s10 = smul.u32 (!%p2302_p2), 240, %s2837_s9 }
 0x142   : > { %776 = sbr.rel (%p2302_p2) target bundleno = 330 (0x14a), region = 68 }
 0x143   : > { %s2175_s7 = scalar_lea.vmem (!%p2302_p2), [#allocation2], %s2174_s10 }
 0x147   : > { %vm780_vm8 = vcmask 64512   ;;  %vm783_vm9 = vcmask 58368   ;;  %v2742_v17 = vmov 0.0  }
 0x148   : > { %2303 = vst.msk [vmem:[%s2175_s7 + $0xd8] sm:$0xff] %vm780_vm8, %v2742_v17  ;;  %2304 = vst.msk [vmem:[%s2175_s7 + $0xe0] sm:$0xff] %vm780_vm8, %v2742_v17 }
 0x149   : > { %2305 = vst.msk [vmem:[%s2175_s7 + $0xe8] sm:$0x3] %vm783_vm9, %v2742_v17 }
 0x14a PF: > { %s792_s11 = smul.u32 240, %s2837_s9  ;;  %v1006_v18 = vld [vmem:[%s3710_s3 + $0x10] sm:$0xff]  ;;  %v1005_v19 = vld [vmem:[%s3710_s3 + $0x8] sm:$0xff]  ;;  %v1004_v22 = vld [vmem:[%s3710_s3] sm:$0xff]  ;;  %s2743_s28 = smov 16   ;;  %vm970_vm10 = vcmask 64512  }
 0x14b   : > { %2651 = vmatprep.subr.mxu1 %v1006_v18  ;;  %2559 = vmatprep.subr.mxu0 %v1006_v18  ;;  %s2744_s8 = smov 8   ;;  %v3242_v49 = vld [vmem:[%s3710_s3 + $0x28] sm:$0xff]  ;;  %v3262_v54 = vld [vmem:[%s3710_s3 + $0x40] sm:$0xff]  ;;  %vm987_vm11 = vcmask 130048   ;;  %vm1007_vm12 = vcmask 195584   ;;  %v2371_v10 = vld [vmem:[%s3710_s3 + $0x18] sm:$0xff] }
 0x14c   : > { %2654 = vmatpush3.msra.mxu1 %v1006_v18  ;;  %2560 = vmatpush3.msra.mxu0 %v1006_v18  ;;  %s3136_s26 = scalar_lea.vmem [#allocation2], %s792_s11  ;;  %v2372_v4 = vld [vmem:[%s3710_s3 + $0x20] sm:$0xff]  ;;  %v2439_v16 = vld [vmem:[%s3710_s3 + $0x38] sm:$0xff] }
 0x14d   : > { %2652 = vmatprep.subr.mxu1 %v1005_v19  ;;  %2561 = vmatprep.subr.mxu0 %v1005_v19 }
 0x14e   : > { %2655 = vmatpush3.msra.mxu1 %v1005_v19  ;;  %2562 = vmatpush3.msra.mxu0 %v1005_v19 }
 0x14f   : > { %2653 = vmatprep.subr.mxu1 %v1004_v22  ;;  %2563 = vmatprep.subr.mxu0 %v1004_v22 }
 0x150   : > { %v3139_v20 = vld [vmem:[%s3136_s26 + $0x62] sm:$0xff]  ;;  %2656 = vmatpush3.msra.mxu1 %v1004_v22  ;;  %2564 = vmatpush3.msra.mxu0 %v1004_v22  ;;  %v3159_v25 = vld [vmem:[%s3136_s26 + $0x6a] sm:$0xff]  ;;  %v3167_v28 = vld [vmem:[%s3136_s26 + $0x79] sm:$0xff] }
 0x151   : > { %v3142_v21 = vld [vmem:[%s3136_s26 + $0x61] sm:$0xff]  ;;  %938 = vrot.lane.b32.xlu1 %v3139_v20, %s2743_s28  ;;  %v3152_v23 = vld [vmem:[%s3136_s26 + $0x69] sm:$0xff]  ;;  %v812_v32 = vld [vmem:[%s3136_s26 + $0x19] sm:$0xff]  ;;  %2589 = vmatprep.subr.mxu1 %v3242_v49 }
 0x152   : > { %874 = vrot.lane.b32.xlu0 %v3142_v21, %s2744_s8  ;;  %v810_v24 = vld [vmem:[%s3136_s26 + $0x1] sm:$0xff]  ;;  %v811_v26 = vld [vmem:[%s3136_s26 + $0x9] sm:$0xff]  ;;  %v3195_v36 = vld [vmem:[%s3136_s26 + $0x91] sm:$0xff]  ;;  %2619 = vmatprep.subr.mxu0 %v3262_v54 }
 0x153   : > { %v826_v27 = vld [vmem:[%s3136_s26 + $0x2] sm:$0xff]  ;;  %v827_v29 = vld [vmem:[%s3136_s26 + $0xa] sm:$0xff]  ;;  %v3180_v31 = vld [vmem:[%s3136_s26 + $0x7a] sm:$0xff] }
 0x154   : > { %v3174_v30 = vld [vmem:[%s3136_s26 + $0x81] sm:$0xff]  ;;  %v3202_v38 = vld [vmem:[%s3136_s26 + $0x99] sm:$0xff]  ;;  %v814_v40 = vld [vmem:[%s3136_s26 + $0x31] sm:$0xff] }
 0x155   : > { %858 = vrot.lane.b32.xlu1 %v810_v24, %s2744_s8  ;;  %v3187_v33 = vld [vmem:[%s3136_s26 + $0x82] sm:$0xff]  ;;  %v828_v35 = vld [vmem:[%s3136_s26 + $0x1a] sm:$0xff]  ;;  %v3208_v39 = vld [vmem:[%s3136_s26 + $0x92] sm:$0xff] }
 0x156   : > { %876 = vrot.lane.b32.xlu0 %v3152_v23, %s2744_s8  ;;  %v813_v34 = vld [vmem:[%s3136_s26 + $0x21] sm:$0xff]  ;;  %v815_v42 = vld [vmem:[%s3136_s26 + $0x39] sm:$0xff]  ;;  %v3223_v44 = vld [vmem:[%s3136_s26 + $0xa9] sm:$0xff] }
 0x157   : > { %v829_v37 = vld [vmem:[%s3136_s26 + $0x22] sm:$0xff]  ;;  %v3215_v41 = vld [vmem:[%s3136_s26 + $0x9a] sm:$0xff]  ;;  %v830_v43 = vld [vmem:[%s3136_s26 + $0x32] sm:$0xff] }
 0x158   : > { %v831_v45 = vld [vmem:[%s3136_s26 + $0x3a] sm:$0xff]  ;;  %v3230_v46 = vld [vmem:[%s3136_s26 + $0xb1] sm:$0xff]  ;;  %v816_v48 = vld [vmem:[%s3136_s26 + $0x49] sm:$0xff] }
 0x159   : > { %860 = vrot.lane.b32.xlu1 %v811_v26, %s2744_s8  ;;  %v3236_v47 = vld [vmem:[%s3136_s26 + $0xaa] sm:$0xff]  ;;  %v3248_v50 = vld [vmem:[%s3136_s26 + $0xb2] sm:$0xff]  ;;  %v3298_v55 = vld [vmem:[%s3136_s26 + $0x60] sm:$0xff] }
 0x15a   : > { %940 = vrot.lane.b32.xlu0 %v3159_v25, %s2743_s28  ;;  %v817_v51 = vld [vmem:[%s3136_s26 + $0x51] sm:$0xff]  ;;  %v3309_v62 = vld [vmem:[%s3136_s26 + $0x68] sm:$0xff]  ;;  %v794_v2 = vld [vmem:[%s3136_s26] sm:$0xff] }
 0x15b   : > { %v832_v52 = vld [vmem:[%s3136_s26 + $0x4a] sm:$0xff]  ;;  %v833_v53 = vld [vmem:[%s3136_s26 + $0x52] sm:$0xff] }
 0x15c   : > { %v795_v8 = vld [vmem:[%s3136_s26 + $0x8] sm:$0xff]  ;;  %v3341_v14 = vld [vmem:[%s3136_s26 + $0x78] sm:$0xff]  ;;  %v2438_v22 = vld [vmem:[%s3710_s3 + $0x30] sm:$0xff] }
 0x15d   : > { %878 = vrot.lane.b32.xlu1 %v3167_v28, %s2744_s8  ;;  %v3370_v26 = vld [vmem:[%s3136_s26 + $0x18] sm:$0xff] }
 0x15e   : > { %922 = vrot.lane.b32.xlu0 %v826_v27, %s2743_s28 }
 0x161   : > { %880 = vrot.lane.b32.xlu1 %v3174_v30, %s2744_s8 }
 0x162   : > { %924 = vrot.lane.b32.xlu0 %v827_v29, %s2743_s28 }
 0x165   : > { %862 = vrot.lane.b32.xlu1 %v812_v32, %s2744_s8 }
 0x166   : > { %942 = vrot.lane.b32.xlu0 %v3180_v31, %s2743_s28 }
 0x169   : > { %864 = vrot.lane.b32.xlu1 %v813_v34, %s2744_s8 }
 0x16a   : > { %944 = vrot.lane.b32.xlu0 %v3187_v33, %s2743_s28 }
 0x16d   : > { %882 = vrot.lane.b32.xlu1 %v3195_v36, %s2744_s8 }
 0x16e   : > { %926 = vrot.lane.b32.xlu0 %v828_v35, %s2743_s28 }
 0x171   : > { %884 = vrot.lane.b32.xlu1 %v3202_v38, %s2744_s8 }
 0x172   : > { %928 = vrot.lane.b32.xlu0 %v829_v37, %s2743_s28 }
 0x175   : > { %866 = vrot.lane.b32.xlu1 %v814_v40, %s2744_s8 }
 0x176   : > { %946 = vrot.lane.b32.xlu0 %v3208_v39, %s2743_s28 }
 0x179   : > { %868 = vrot.lane.b32.xlu1 %v815_v42, %s2744_s8 }
 0x17a   : > { %948 = vrot.lane.b32.xlu0 %v3215_v41, %s2743_s28 }
 0x17d   : > { %886 = vrot.lane.b32.xlu1 %v3223_v44, %s2744_s8 }
 0x17e   : > { %930 = vrot.lane.b32.xlu0 %v830_v43, %s2743_s28 }
 0x181   : > { %888 = vrot.lane.b32.xlu1 %v3230_v46, %s2744_s8 }
 0x182   : > { %932 = vrot.lane.b32.xlu0 %v831_v45, %s2743_s28 }
 0x185   : > { %870 = vrot.lane.b32.xlu1 %v816_v48, %s2744_s8 }
 0x186   : > { %950 = vrot.lane.b32.xlu0 %v3236_v47, %s2743_s28 }
 0x189   : > { %872 = vrot.lane.b32.xlu1 %v817_v51, %s2744_s8 }
 0x18a   : > { %952 = vrot.lane.b32.xlu0 %v3248_v50, %s2743_s28 }
 0x18d   : > { %936 = vrot.lane.b32.xlu1 %v833_v53, %s2743_s28 }
 0x18e   : > { %934 = vrot.lane.b32.xlu0 %v832_v52, %s2743_s28 }
 0x191   : > { %1285 = vrot.lane.b32.xlu1 %v813_v34, %s2744_s8 }
 0x192   : > { %1283 = vrot.lane.b32.xlu0 %v812_v32, %s2744_s8 }
 0x195   : > { %1349 = vrot.lane.b32.xlu1 %v829_v37, %s2743_s28 }
 0x196   : > { %1347 = vrot.lane.b32.xlu0 %v828_v35, %s2743_s28 }
 0x199   : > { %1708 = vrot.lane.b32.xlu1 %v815_v42, %s2744_s8 }
 0x19a   : > { %1706 = vrot.lane.b32.xlu0 %v814_v40, %s2744_s8 }
 0x19d   : > { %1287 = vrot.lane.b32.xlu1 %v814_v40, %s2744_s8 }
 0x19e   : > { %1770 = vrot.lane.b32.xlu0 %v830_v43, %s2743_s28 }
 0x1a1   : > { %1289 = vrot.lane.b32.xlu1 %v815_v42, %s2744_s8 }
 0x1a2   : > { %1772 = vrot.lane.b32.xlu0 %v831_v45, %s2743_s28 }
 0x1a5   : > { %1353 = vrot.lane.b32.xlu1 %v831_v45, %s2743_s28 }
 0x1a6   : > { %1351 = vrot.lane.b32.xlu0 %v830_v43, %s2743_s28  ;;  %v3403_v43 = vld [vmem:[%s3136_s26 + $0x98] sm:$0xff] }
 0x1a9   : > { %1712 = vrot.lane.b32.xlu1 %v817_v51, %s2744_s8 }
 0x1aa   : > { %1710 = vrot.lane.b32.xlu0 %v816_v48, %s2744_s8 }
 0x1ad   : > { %1291 = vrot.lane.b32.xlu1 %v816_v48, %s2744_s8 }
 0x1ae   : > { %1774 = vrot.lane.b32.xlu0 %v832_v52, %s2743_s28 }
 0x1b1   : > { %1293 = vrot.lane.b32.xlu1 %v817_v51, %s2744_s8 }
 0x1b2   : > { %1776 = vrot.lane.b32.xlu0 %v833_v53, %s2743_s28 }
 0x1b5   : > { %1357 = vrot.lane.b32.xlu1 %v833_v53, %s2743_s28 }
 0x1b6   : > { %1355 = vrot.lane.b32.xlu0 %v832_v52, %s2743_s28 }
 0x1b9   : > { %1716 = vrot.lane.b32.xlu1 %v3152_v23, %s2744_s8 }
 0x1ba   : > { %1714 = vrot.lane.b32.xlu0 %v3142_v21, %s2744_s8 }
 0x1bd   : > { %1295 = vrot.lane.b32.xlu1 %v3142_v21, %s2744_s8 }
 0x1be   : > { %1778 = vrot.lane.b32.xlu0 %v3139_v20, %s2743_s28 }
 0x1c1   : > { %1297 = vrot.lane.b32.xlu1 %v3152_v23, %s2744_s8 }
 0x1c2   : > { %1780 = vrot.lane.b32.xlu0 %v3159_v25, %s2743_s28 }
 0x1c3   : > { %v939_v56 = vpop.permute.xlu1 %938 }
 0x1c4   : > { %v875_v57 = vpop.permute.xlu0 %874 }
 0x1c5   : > { %v979_v58 = vsel %vm970_vm10, %v3298_v55, %v875_v57  ;;  %1361 = vrot.lane.b32.xlu1 %v3159_v25, %s2743_s28 }
 0x1c6   : > { %1359 = vrot.lane.b32.xlu0 %v3139_v20, %s2743_s28  ;;  %v996_v59 = vsel %vm987_vm11, %v979_v58, %v939_v56  ;;  %v3356_v20 = vld [vmem:[%s3136_s26 + $0x80] sm:$0xff]  ;;  %v3425_v56 = vld [vmem:[%s3136_s26 + $0x38] sm:$0xff] }
 0x1c7   : > { %2577 = vmatprep.mubr.msk.f32.mxu1 %vm1007_vm12, %v996_v59  ;;  %v859_v61 = vpop.permute.xlu1 %858 }
 0x1c8   : > { %v877_v60 = vpop.permute.xlu0 %876  ;;  %v971_v5 = vsel %vm970_vm10, %v794_v2, %v859_v61 }
 0x1c9   : > { %1720 = vrot.lane.b32.xlu1 %v3174_v30, %s2744_s8  ;;  %v980_v63 = vsel %vm970_vm10, %v3309_v62, %v877_v60  ;;  %v3436_v60 = vld [vmem:[%s3136_s26 + $0xa8] sm:$0xff] }
 0x1ca   : > { %1718 = vrot.lane.b32.xlu0 %v3167_v28, %s2744_s8 }
 0x1cb   : > { %v861_v1 = vpop.permute.xlu1 %860 }
 0x1cc   : > { %v941_v0 = vpop.permute.xlu0 %940  ;;  %v972_v11 = vsel %vm970_vm10, %v795_v8, %v861_v1 }
 0x1cd   : > { %v997_v3 = vsel %vm987_vm11, %v980_v63, %v941_v0  ;;  %1299 = vrot.lane.b32.xlu1 %v3167_v28, %s2744_s8  ;;  %v2419_v63 = vld [vmem:[%s3136_s26 + $0xc9] sm:$0xff] }
 0x1ce   : > { %1782 = vrot.lane.b32.xlu0 %v3180_v31, %s2743_s28  ;;  %2578 = vmatmul.mubr.msk.f32.vlgmr.msra.gmra.mxu1 %vm1007_vm12, %v997_v3  ;;  %v3449_v3 = vld [vmem:[%s3136_s26 + $0xb0] sm:$0xff] }
 0x1cf   : > { %v879_v7 = vpop.permute.xlu1 %878  ;;  %2590 = vmatpush3.msra.mxu1 %v3242_v49  ;;  %v3414_v49 = vld [vmem:[%s3136_s26 + $0x30] sm:$0xff] }
 0x1d0   : > { %v923_v6 = vpop.permute.xlu0 %922  ;;  %2591 = vmatprep.subr.mxu1 %v2372_v4  ;;  %v981_v17 = vsel %vm970_vm10, %v3341_v14, %v879_v7  ;;  %v3459_v7 = vld [vmem:[%s3136_s26 + $0x48] sm:$0xff] }
 0x1d1   : > { %v988_v9 = vsel %vm987_vm11, %v971_v5, %v923_v6  ;;  %1301 = vrot.lane.b32.xlu1 %v3174_v30, %s2744_s8  ;;  %2592 = vmatpush3.msra.mxu1 %v2372_v4 }
 0x1d2   : > { %1784 = vrot.lane.b32.xlu0 %v3187_v33, %s2743_s28  ;;  %2565 = vmatprep.mubr.msk.f32.mxu0 %vm1007_vm12, %v988_v9  ;;  %v3463_v9 = vld [vmem:[%s3136_s26 + $0x50] sm:$0xff] }
 0x1d3   : > { %v881_v13 = vpop.permute.xlu1 %880  ;;  %2593 = vmatprep.subr.mxu1 %v2371_v10 }
 0x1d4   : > { %v925_v12 = vpop.permute.xlu0 %924  ;;  %2594 = vmatpush3.msra.mxu1 %v2371_v10  ;;  %v982_v23 = vsel %vm970_vm10, %v3356_v20, %v881_v13  ;;  %v2435_v10 = vld [vmem:[%s3136_s26 + $0xca] sm:$0xff] }
 0x1d5   : > { %v989_v15 = vsel %vm987_vm11, %v972_v11, %v925_v12  ;;  %1365 = vrot.lane.b32.xlu1 %v3187_v33, %s2743_s28 }
 0x1d6   : > { %1363 = vrot.lane.b32.xlu0 %v3180_v31, %s2743_s28  ;;  %2566 = vmatmul.mubr.msk.f32.vlgmr.msra.gmra.mxu0 %vm1007_vm12, %v989_v15  ;;  %v3381_v31 = vld [vmem:[%s3136_s26 + $0x20] sm:$0xff] }
 0x1d7   : > { %v863_v19 = vpop.permute.xlu1 %862  ;;  %2620 = vmatpush3.msra.mxu0 %v3262_v54 }
 0x1d8   : > { %v943_v18 = vpop.permute.xlu0 %942  ;;  %2621 = vmatprep.subr.mxu0 %v2439_v16  ;;  %v973_v28 = vsel %vm970_vm10, %v3370_v26, %v863_v19 }
 0x1d9   : > { %v998_v21 = vsel %vm987_vm11, %v981_v17, %v943_v18  ;;  %1724 = vrot.lane.b32.xlu1 %v3202_v38, %s2744_s8  ;;  %2622 = vmatpush3.msra.mxu0 %v2439_v16 }
 0x1da   : > { %1722 = vrot.lane.b32.xlu0 %v3195_v36, %s2744_s8  ;;  %2580 = vmatprep.mubr.msk.f32.mxu1 %vm1007_vm12, %v998_v21  ;;  %v2420_v21 = vld [vmem:[%s3136_s26 + $0xd9] sm:$0xff] }
 0x1db   : > { %v865_v25 = vpop.permute.xlu1 %864  ;;  %2623 = vmatprep.subr.mxu0 %v2438_v22 }
 0x1dc   : > { %v945_v24 = vpop.permute.xlu0 %944  ;;  %2624 = vmatpush3.msra.mxu0 %v2438_v22  ;;  %v974_v33 = vsel %vm970_vm10, %v3381_v31, %v865_v25  ;;  %v2421_v22 = vld [vmem:[%s3136_s26 + $0xe1] sm:$0xff] }
 0x1dd   : > { %v999_v27 = vsel %vm987_vm11, %v982_v23, %v945_v24  ;;  %1303 = vrot.lane.b32.xlu1 %v3195_v36, %s2744_s8  ;;  %v3392_v36 = vld [vmem:[%s3136_s26 + $0x90] sm:$0xff] }
 0x1de   : > { %1786 = vrot.lane.b32.xlu0 %v3208_v39, %s2743_s28  ;;  %2581 = vmatmul.mubr.msk.f32.gmra.mxu1 %vm1007_vm12, %v999_v27 }
 0x1df   : > { %v883_v30 = vpop.permute.xlu1 %882 }
 0x1e0   : > { %v927_v29 = vpop.permute.xlu0 %926 }
 0x1e1   : > { %v990_v32 = vsel %vm987_vm11, %v973_v28, %v927_v29  ;;  %1305 = vrot.lane.b32.xlu1 %v3202_v38, %s2744_s8  ;;  %v983_v38 = vsel %vm970_vm10, %v3392_v36, %v883_v30  ;;  %v2436_v30 = vld [vmem:[%s3136_s26 + $0xda] sm:$0xff] }
 0x1e2   : > { %1788 = vrot.lane.b32.xlu0 %v3215_v41, %s2743_s28  ;;  %2568 = vmatprep.mubr.msk.f32.mxu0 %vm1007_vm12, %v990_v32  ;;  %v2437_v32 = vld [vmem:[%s3136_s26 + $0xe2] sm:$0xff] }
 0x1e3   : > { %v885_v35 = vpop.permute.xlu1 %884 }
 0x1e4   : > { %v929_v34 = vpop.permute.xlu0 %928 }
 0x1e5   : > { %v991_v37 = vsel %vm987_vm11, %v974_v33, %v929_v34  ;;  %1369 = vrot.lane.b32.xlu1 %v3215_v41, %s2743_s28 }
 0x1e6   : > { %1367 = vrot.lane.b32.xlu0 %v3208_v39, %s2743_s28  ;;  %2569 = vmatmul.mubr.msk.f32.gmra.mxu0 %vm1007_vm12, %v991_v37  ;;  %v984_v39 = vsel %vm970_vm10, %v3403_v43, %v885_v35 }
 0x1e7   : > { %v867_v42 = vpop.permute.xlu1 %866 }
 0x1e8   : > { %v947_v40 = vpop.permute.xlu0 %946  ;;  %v975_v52 = vsel %vm970_vm10, %v3414_v49, %v867_v42 }
 0x1e9   : > { %v1000_v45 = vsel %vm987_vm11, %v983_v38, %v947_v40  ;;  %1728 = vrot.lane.b32.xlu1 %v3230_v46, %s2744_s8 }
 0x1ea   : > { %1726 = vrot.lane.b32.xlu0 %v3223_v44, %s2744_s8  ;;  %2583 = vmatprep.mubr.msk.f32.mxu1 %vm1007_vm12, %v1000_v45 }
 0x1eb   : > { %v869_v48 = vpop.permute.xlu1 %868 }
 0x1ec   : > { %v949_v41 = vpop.permute.xlu0 %948 }
 0x1ed   : > { %v1001_v51 = vsel %vm987_vm11, %v984_v39, %v949_v41  ;;  %1307 = vrot.lane.b32.xlu1 %v3223_v44, %s2744_s8  ;;  %v976_v44 = vsel %vm970_vm10, %v3425_v56, %v869_v48 }
 0x1ee   : > { %1790 = vrot.lane.b32.xlu0 %v3236_v47, %s2743_s28  ;;  %2584 = vmatmul.mubr.msk.f32.gmra.mxu1 %vm1007_vm12, %v1001_v51 }
 0x1ef   : > { %v887_v54 = vpop.permute.xlu1 %886 }
 0x1f0   : > { %v931_v53 = vpop.permute.xlu0 %930  ;;  %v985_v0 = vsel %vm970_vm10, %v3436_v60, %v887_v54 }
 0x1f1   : > { %v992_v57 = vsel %vm987_vm11, %v975_v52, %v931_v53  ;;  %1309 = vrot.lane.b32.xlu1 %v3230_v46, %s2744_s8  ;;  %v2418_v46 = vld [vmem:[%s3136_s26 + $0xc1] sm:$0xff] }
 0x1f2   : > { %1792 = vrot.lane.b32.xlu0 %v3248_v50, %s2743_s28  ;;  %2571 = vmatprep.mubr.msk.f32.mxu0 %vm1007_vm12, %v992_v57 }
 0x1f3   : > { %v889_v59 = vpop.permute.xlu1 %888 }
 0x1f4   : > { %v933_v58 = vpop.permute.xlu0 %932 }
 0x1f5   : > { %v993_v61 = vsel %vm987_vm11, %v976_v44, %v933_v58  ;;  %1373 = vrot.lane.b32.xlu1 %v3248_v50, %s2743_s28  ;;  %v986_v50 = vsel %vm970_vm10, %v3449_v3, %v889_v59 }
 0x1f6   : > { %1371 = vrot.lane.b32.xlu0 %v3236_v47, %s2743_s28  ;;  %2572 = vmatmul.mubr.msk.f32.gmra.mxu0 %vm1007_vm12, %v993_v61  ;;  %v2434_v47 = vld [vmem:[%s3136_s26 + $0xc2] sm:$0xff] }
 0x1f7   : > { %v871_v2 = vpop.permute.xlu1 %870 }
 0x1f8   : > { %v951_v1 = vpop.permute.xlu0 %950  ;;  %v977_v11 = vsel %vm970_vm10, %v3459_v7, %v871_v2 }
 0x1f9   : > { %v1002_v4 = vsel %vm987_vm11, %v985_v0, %v951_v1  ;;  %1732 = vrot.lane.b32.xlu1 %v2419_v63, %s2744_s8 }
 0x1fa   : > { %1730 = vrot.lane.b32.xlu0 %v2418_v46, %s2744_s8  ;;  %2586 = vmatprep.mubr.msk.f32.mxu1 %vm1007_vm12, %v1002_v4 }
 0x1fb   : > { %v873_v6 = vpop.permute.xlu1 %872 }
 0x1fc   : > { %v953_v5 = vpop.permute.xlu0 %952  ;;  %v978_v12 = vsel %vm970_vm10, %v3463_v9, %v873_v6 }
 0x1fd   : > { %v1003_v8 = vsel %vm987_vm11, %v986_v50, %v953_v5  ;;  %1311 = vrot.lane.b32.xlu1 %v2418_v46, %s2744_s8 }
 0x1fe   : > { %1794 = vrot.lane.b32.xlu0 %v2434_v47, %s2743_s28  ;;  %2587 = vmatmul.mubr.msk.f32.gmra.mxu1 %vm1007_vm12, %v1003_v8 }
 0x1ff   : > { %v937_v15 = vpop.permute.xlu1 %936 }
 0x200   : > { %v935_v13 = vpop.permute.xlu0 %934  ;;  %v995_v17 = vsel %vm987_vm11, %v978_v12, %v937_v15 }
 0x201   : > { %v994_v16 = vsel %vm987_vm11, %v977_v11, %v935_v13  ;;  %1313 = vrot.lane.b32.xlu1 %v2419_v63, %s2744_s8 }
 0x202   : > { %1796 = vrot.lane.b32.xlu0 %v2435_v10, %s2743_s28  ;;  %2574 = vmatprep.mubr.msk.f32.mxu0 %vm1007_vm12, %v994_v16 }
 0x203   : > { %2575 = vmatmul.mubr.msk.f32.gmra.mxu0 %vm1007_vm12, %v995_v17  ;;  %v1286_v19 = vpop.permute.xlu1 %1285 }
 0x204   : > { %v1284_v18 = vpop.permute.xlu0 %1283  ;;  %v1396_v24 = vsel %vm970_vm10, %v3381_v31, %v1286_v19 }
 0x205   : > { %1377 = vrot.lane.b32.xlu1 %v2435_v10, %s2743_s28  ;;  %v1395_v23 = vsel %vm970_vm10, %v3370_v26, %v1284_v18 }
 0x206   : > { %1375 = vrot.lane.b32.xlu0 %v2434_v47, %s2743_s28 }
 0x207   : > { %v1350_v27 = vpop.permute.xlu1 %1349 }
 0x208   : > { %v1348_v25 = vpop.permute.xlu0 %1347  ;;  %v1412_v29 = vsel %vm987_vm11, %v1396_v24, %v1350_v27 }
 0x209   : > { %v1411_v28 = vsel %vm987_vm11, %v1395_v23, %v1348_v25  ;;  %1736 = vrot.lane.b32.xlu1 %v2421_v22, %s2744_s8 }
 0x20a   : > { %1734 = vrot.lane.b32.xlu0 %v2420_v21, %s2744_s8  ;;  %2595 = vmatprep.mubr.msk.f32.mxu1 %vm1007_vm12, %v1411_v28 }
 0x20b   : > { %2596 = vmatmul.mubr.msk.f32.vlgmr.msra.gmra.mxu1 %vm1007_vm12, %v1412_v29  ;;  %v1709_v33 = vpop.permute.xlu1 %1708 }
 0x20c   : > { %v1707_v26 = vpop.permute.xlu0 %1706  ;;  %v1819_v38 = vsel %vm970_vm10, %v3425_v56, %v1709_v33 }
 0x20d   : > { %1800 = vrot.lane.b32.xlu1 %v2437_v32, %s2743_s28  ;;  %v1818_v31 = vsel %vm970_vm10, %v3414_v49, %v1707_v26 }
 0x20e   : > { %1798 = vrot.lane.b32.xlu0 %v2436_v30, %s2743_s28 }
 0x20f   : > { %v1288_v35 = vpop.permute.xlu1 %1287 }
 0x210   : > { %v1771_v34 = vpop.permute.xlu0 %1770  ;;  %v1397_v39 = vsel %vm970_vm10, %v3414_v49, %v1288_v35 }
 0x211   : > { %v1834_v37 = vsel %vm987_vm11, %v1818_v31, %v1771_v34 }
 0x212   : > { %2625 = vmatprep.mubr.msk.f32.mxu0 %vm1007_vm12, %v1834_v37 }
 0x213   : > { %v1290_v42 = vpop.permute.xlu1 %1289 }
 0x214   : > { %v1773_v40 = vpop.permute.xlu0 %1772  ;;  %v1398_v41 = vsel %vm970_vm10, %v3425_v56, %v1290_v42 }
 0x215   : > { %v1835_v45 = vsel %vm987_vm11, %v1819_v38, %v1773_v40 }
 0x216   : > { %2626 = vmatmul.mubr.msk.f32.vlgmr.msra.gmra.mxu0 %vm1007_vm12, %v1835_v45 }
 0x217   : > { %v1354_v51 = vpop.permute.xlu1 %1353 }
 0x218   : > { %v1352_v48 = vpop.permute.xlu0 %1351  ;;  %v1414_v53 = vsel %vm987_vm11, %v1398_v41, %v1354_v51 }
 0x219   : > { %v1413_v52 = vsel %vm987_vm11, %v1397_v39, %v1352_v48 }
 0x21a   : > { %2598 = vmatprep.mubr.msk.f32.mxu1 %vm1007_vm12, %v1413_v52 }
 0x21b   : > { %2599 = vmatmul.mubr.msk.f32.gmra.mxu1 %vm1007_vm12, %v1414_v53  ;;  %v1713_v57 = vpop.permute.xlu1 %1712 }
 0x21c   : > { %v1711_v54 = vpop.permute.xlu0 %1710  ;;  %v1821_v56 = vsel %vm970_vm10, %v3463_v9, %v1713_v57 }
 0x21d   : > { %v1820_v44 = vsel %vm970_vm10, %v3459_v7, %v1711_v54 }
 0x21f   : > { %v1292_v49 = vpop.permute.xlu1 %1291 }
 0x220   : > { %v1775_v58 = vpop.permute.xlu0 %1774  ;;  %v1399_v0 = vsel %vm970_vm10, %v3459_v7, %v1292_v49 }
 0x221   : > { %v1836_v59 = vsel %vm987_vm11, %v1820_v44, %v1775_v58 }
 0x222   : > { %2628 = vmatprep.mubr.msk.f32.mxu0 %vm1007_vm12, %v1836_v59 }
 0x223   : > { %v1294_v46 = vpop.permute.xlu1 %1293 }
 0x224   : > { %v1777_v61 = vpop.permute.xlu0 %1776  ;;  %v1400_v1 = vsel %vm970_vm10, %v3463_v9, %v1294_v46 }
 0x225   : > { %v1837_v63 = vsel %vm987_vm11, %v1821_v56, %v1777_v61 }
 0x226   : > { %2629 = vmatmul.mubr.msk.f32.gmra.mxu0 %vm1007_vm12, %v1837_v63 }
 0x227   : > { %v1358_v4 = vpop.permute.xlu1 %1357 }
 0x228   : > { %v1356_v2 = vpop.permute.xlu0 %1355  ;;  %v1416_v50 = vsel %vm987_vm11, %v1400_v1, %v1358_v4 }
 0x229   : > { %v1415_v47 = vsel %vm987_vm11, %v1399_v0, %v1356_v2 }
 0x22a   : > { %2601 = vmatprep.mubr.msk.f32.mxu1 %vm1007_vm12, %v1415_v47 }
 0x22b   : > { %2602 = vmatmul.mubr.msk.f32.gmra.mxu1 %vm1007_vm12, %v1416_v50  ;;  %v1717_v6 = vpop.permute.xlu1 %1716 }
 0x22c   : > { %v1715_v5 = vpop.permute.xlu0 %1714  ;;  %v1823_v9 = vsel %vm970_vm10, %v3309_v62, %v1717_v6 }
 0x22d   : > { %v1822_v8 = vsel %vm970_vm10, %v3298_v55, %v1715_v5 }
 0x22f   : > { %v1296_v7 = vpop.permute.xlu1 %1295 }
 0x230   : > { %v1779_v10 = vpop.permute.xlu0 %1778  ;;  %v1401_v16 = vsel %vm970_vm10, %v3298_v55, %v1296_v7  ;;  %v2402_v7 = vld [vmem:[%s3136_s26 + $0xc0] sm:$0xff] }
 0x231   : > { %v1838_v11 = vsel %vm987_vm11, %v1822_v8, %v1779_v10 }
 0x232   : > { %2631 = vmatprep.mubr.msk.f32.mxu0 %vm1007_vm12, %v1838_v11 }
 0x233   : > { %v1298_v13 = vpop.permute.xlu1 %1297 }
 0x234   : > { %v1781_v12 = vpop.permute.xlu0 %1780  ;;  %v1402_v17 = vsel %vm970_vm10, %v3309_v62, %v1298_v13 }
 0x235   : > { %v1839_v15 = vsel %vm987_vm11, %v1823_v9, %v1781_v12  ;;  %v2403_v12 = vld [vmem:[%s3136_s26 + $0xc8] sm:$0xff] }
 0x236   : > { %2632 = vmatmul.mubr.msk.f32.gmra.mxu0 %vm1007_vm12, %v1839_v15 }
 0x237   : > { %v1362_v19 = vpop.permute.xlu1 %1361 }
 0x238   : > { %v1360_v18 = vpop.permute.xlu0 %1359  ;;  %v1418_v22 = vsel %vm987_vm11, %v1402_v17, %v1362_v19 }
 0x239   : > { %v1417_v21 = vsel %vm987_vm11, %v1401_v16, %v1360_v18 }
 0x23a   : > { %2604 = vmatprep.mubr.msk.f32.mxu1 %vm1007_vm12, %v1417_v21 }
 0x23b   : > { %2605 = vmatmul.mubr.msk.f32.gmra.mxu1 %vm1007_vm12, %v1418_v22  ;;  %v1721_v24 = vpop.permute.xlu1 %1720 }
 0x23c   : > { %v1719_v23 = vpop.permute.xlu0 %1718  ;;  %v1825_v62 = vsel %vm970_vm10, %v3356_v20, %v1721_v24 }
 0x23d   : > { %v1824_v25 = vsel %vm970_vm10, %v3341_v14, %v1719_v23 }
 0x23f   : > { %v1300_v55 = vpop.permute.xlu1 %1299 }
 0x240   : > { %v1783_v27 = vpop.permute.xlu0 %1782  ;;  %v1403_v26 = vsel %vm970_vm10, %v3341_v14, %v1300_v55  ;;  %v2404_v55 = vld [vmem:[%s3136_s26 + $0xd8] sm:$0xff] }
 0x241   : > { %v1840_v28 = vsel %vm987_vm11, %v1824_v25, %v1783_v27 }
 0x242   : > { %2634 = vmatprep.mubr.msk.f32.mxu0 %vm1007_vm12, %v1840_v28  ;;  %v2405_v28 = vld [vmem:[%s3136_s26 + $0xe0] sm:$0xff] }
 0x243   : > { %v1302_v30 = vpop.permute.xlu1 %1301 }
 0x244   : > { %v1785_v29 = vpop.permute.xlu0 %1784  ;;  %v1404_v33 = vsel %vm970_vm10, %v3356_v20, %v1302_v30 }
 0x245   : > { %v1841_v32 = vsel %vm987_vm11, %v1825_v62, %v1785_v29 }
 0x246   : > { %2635 = vmatmul.mubr.msk.f32.gmra.mxu0 %vm1007_vm12, %v1841_v32 }
 0x247   : > { %v1366_v34 = vpop.permute.xlu1 %1365 }
 0x248   : > { %v1364_v31 = vpop.permute.xlu0 %1363  ;;  %v1420_v37 = vsel %vm987_vm11, %v1404_v33, %v1366_v34 }
 0x249   : > { %v1419_v35 = vsel %vm987_vm11, %v1403_v26, %v1364_v31  ;;  %v3618_v31 = vld [vmem:[%s3711_s4] ss:$0 sm:$0xff] }
 0x24a   : > { %2607 = vmatprep.mubr.msk.f32.mxu1 %vm1007_vm12, %v1419_v35 }
 0x24b   : > { %2608 = vmatmul.mubr.msk.f32.gmra.mxu1 %vm1007_vm12, %v1420_v37  ;;  %v1725_v40 = vpop.permute.xlu1 %1724 }
 0x24c   : > { %v1723_v38 = vpop.permute.xlu0 %1722  ;;  %v1827_v20 = vsel %vm970_vm10, %v3403_v43, %v1725_v40 }
 0x24d   : > { %v1826_v42 = vsel %vm970_vm10, %v3392_v36, %v1723_v38 }
 0x24f   : > { %v1304_v14 = vpop.permute.xlu1 %1303 }
 0x250   : > { %v1787_v45 = vpop.permute.xlu0 %1786  ;;  %v1405_v52 = vsel %vm970_vm10, %v3392_v36, %v1304_v14 }
 0x251   : > { %v1842_v39 = vsel %vm987_vm11, %v1826_v42, %v1787_v45 }
 0x252   : > { %2637 = vmatprep.mubr.msk.f32.mxu0 %vm1007_vm12, %v1842_v39 }
 0x253   : > { %v1306_v48 = vpop.permute.xlu1 %1305 }
 0x254   : > { %v1789_v41 = vpop.permute.xlu0 %1788  ;;  %v1406_v53 = vsel %vm970_vm10, %v3403_v43, %v1306_v48 }
 0x255   : > { %v1843_v51 = vsel %vm987_vm11, %v1827_v20, %v1789_v41 }
 0x256   : > { %2638 = vmatmul.mubr.msk.f32.gmra.mxu0 %vm1007_vm12, %v1843_v51 }
 0x257   : > { %v1370_v57 = vpop.permute.xlu1 %1369 }
 0x258   : > { %v1368_v54 = vpop.permute.xlu0 %1367  ;;  %v1422_v58 = vsel %vm987_vm11, %v1406_v53, %v1370_v57 }
 0x259   : > { %v1421_v44 = vsel %vm987_vm11, %v1405_v52, %v1368_v54 }
 0x25a   : > { %2610 = vmatprep.mubr.msk.f32.mxu1 %vm1007_vm12, %v1421_v44 }
 0x25b   : > { %2611 = vmatmul.mubr.msk.f32.gmra.mxu1 %vm1007_vm12, %v1422_v58  ;;  %v1729_v59 = vpop.permute.xlu1 %1728 }
 0x25c   : > { %v1727_v49 = vpop.permute.xlu0 %1726  ;;  %v1829_v43 = vsel %vm970_vm10, %v3449_v3, %v1729_v59 }
 0x25d   : > { %v1828_v56 = vsel %vm970_vm10, %v3436_v60, %v1727_v49 }
 0x25f   : > { %v1308_v36 = vpop.permute.xlu1 %1307 }
 0x260   : > { %v1791_v61 = vpop.permute.xlu0 %1790  ;;  %v1407_v2 = vsel %vm970_vm10, %v3436_v60, %v1308_v36 }
 0x261   : > { %v1844_v46 = vsel %vm987_vm11, %v1828_v56, %v1791_v61 }
 0x262   : > { %2640 = vmatprep.mubr.msk.f32.mxu0 %vm1007_vm12, %v1844_v46 }
 0x263   : > { %v1310_v0 = vpop.permute.xlu1 %1309 }
 0x264   : > { %v1793_v63 = vpop.permute.xlu0 %1792  ;;  %v1408_v4 = vsel %vm970_vm10, %v3449_v3, %v1310_v0 }
 0x265   : > { %v1845_v1 = vsel %vm987_vm11, %v1829_v43, %v1793_v63 }
 0x266   : > { %2641 = vmatmul.mubr.msk.f32.gmra.mxu0 %vm1007_vm12, %v1845_v1 }
 0x267   : > { %v1374_v50 = vpop.permute.xlu1 %1373 }
 0x268   : > { %v1372_v47 = vpop.permute.xlu0 %1371  ;;  %v1424_v6 = vsel %vm987_vm11, %v1408_v4, %v1374_v50 }
 0x269   : > { %v1423_v5 = vsel %vm987_vm11, %v1407_v2, %v1372_v47 }
 0x26a   : > { %2613 = vmatprep.mubr.msk.f32.mxu1 %vm1007_vm12, %v1423_v5 }
 0x26b   : > { %2614 = vmatmul.mubr.msk.f32.gmra.mxu1 %vm1007_vm12, %v1424_v6  ;;  %v1733_v10 = vpop.permute.xlu1 %1732 }
 0x26c   : > { %v1731_v8 = vpop.permute.xlu0 %1730  ;;  %v1831_v13 = vsel %vm970_vm10, %v2403_v12, %v1733_v10 }
 0x26d   : > { %v1830_v11 = vsel %vm970_vm10, %v2402_v7, %v1731_v8 }
 0x26f   : > { %v1312_v60 = vpop.permute.xlu1 %1311 }
 0x270   : > { %v1795_v9 = vpop.permute.xlu0 %1794  ;;  %v1409_v18 = vsel %vm970_vm10, %v2402_v7, %v1312_v60 }
 0x271   : > { %v1846_v3 = vsel %vm987_vm11, %v1830_v11, %v1795_v9 }
 0x272   : > { %2643 = vmatprep.mubr.msk.f32.mxu0 %vm1007_vm12, %v1846_v3 }
 0x273   : > { %v1314_v16 = vpop.permute.xlu1 %1313 }
 0x274   : > { %v1797_v15 = vpop.permute.xlu0 %1796  ;;  %v1410_v19 = vsel %vm970_vm10, %v2403_v12, %v1314_v16 }
 0x275   : > { %v1847_v17 = vsel %vm987_vm11, %v1831_v13, %v1797_v15 }
 0x276   : > { %2644 = vmatmul.mubr.msk.f32.gmra.mxu0 %vm1007_vm12, %v1847_v17 }
 0x277   : > { %v1378_v22 = vpop.permute.xlu1 %1377 }
 0x278   : > { %v1376_v21 = vpop.permute.xlu0 %1375  ;;  %v1426_v24 = vsel %vm987_vm11, %v1410_v19, %v1378_v22 }
 0x279   : > { %v1425_v23 = vsel %vm987_vm11, %v1409_v18, %v1376_v21 }
 0x27a   : > { %2616 = vmatprep.mubr.msk.f32.mxu1 %vm1007_vm12, %v1425_v23 }
 0x27b   : > { %2617 = vmatmul.mubr.msk.f32.gmra.mxu1 %vm1007_vm12, %v1426_v24  ;;  %v1737_v27 = vpop.permute.xlu1 %1736 }
 0x27c   : > { %v1735_v25 = vpop.permute.xlu0 %1734  ;;  %v1833_v29 = vsel %vm970_vm10, %v2405_v28, %v1737_v27 }
 0x27d   : > { %v1832_v62 = vsel %vm970_vm10, %v2404_v55, %v1735_v25 }
 0x27f   : > { %v1801_v32 = vpop.permute.xlu1 %1800 }
 0x280   : > { %v1799_v30 = vpop.permute.xlu0 %1798  ;;  %v1849_v33 = vsel %vm987_vm11, %v1833_v29, %v1801_v32 }
 0x281   : > { %v1848_v26 = vsel %vm987_vm11, %v1832_v62, %v1799_v30 }
 0x282   : > { %2646 = vmatprep.mubr.msk.f32.mxu0 %vm1007_vm12, %v1848_v26 }
 0x283   : > { %2647 = vmatmul.mubr.msk.f32.gmra.mxu0 %vm1007_vm12, %v1849_v33 }
 0x28e   : > { %v2579_v34 = vpop.f32.mrf.mxu1 }
 0x28f   : > { %v3621_v35 = vadd.f32 %v2579_v34, %v3618_v31 }
 0x290   : > { %v1162_v37 = vpop.f32.mrf.mxu1 }
 0x291   : > { %v3624_v38 = vadd.f32 %v3618_v31, %v1162_v37 }
 0x296   : > { %v2567_v51 = vpop.f32.mrf.mxu0 }
 0x297   : > { %v1202_v46 = vadd.f32 %v2567_v51, %v3618_v31 }
 0x298   : > { %v1122_v57 = vpop.f32.mrf.mxu0 }
 0x299   : > { %v1201_v0 = vadd.f32 %v3618_v31, %v1122_v57 }
 0x29e   : > { %v2582_v40 = vpop.f32.mrf.mxu1 }
 0x29f   : > { %v3627_v42 = vadd.f32 %v2582_v40, %v3618_v31 }
 0x2a0   : > { %v1172_v45 = vpop.f32.mrf.mxu1 }
 0x2a1   : > { %v3630_v14 = vadd.f32 %v3618_v31, %v1172_v45 }
 0x2a6   : > { %v2570_v58 = vpop.f32.mrf.mxu0 }
 0x2a7   : > { %v1204_v8 = vadd.f32 %v2570_v58, %v3618_v31 }
 0x2a8   : > { %v1132_v49 = vpop.f32.mrf.mxu0 }
 0x2a9   : > { %v1203_v7 = vadd.f32 %v3618_v31, %v1132_v49 }
 0x2ae   : > { %v2585_v39 = vpop.f32.mrf.mxu1 }
 0x2af   : > { %v3633_v20 = vadd.f32 %v2585_v39, %v3618_v31 }
 0x2b0   : > { %v1182_v41 = vpop.f32.mrf.mxu1 }
 0x2b1   : > { %v3636_v48 = vadd.f32 %v3618_v31, %v1182_v41 }
 0x2b6   : > { %v2573_v59 = vpop.f32.mrf.mxu0 }
 0x2b7   : > { %v1206_v16 = vadd.f32 %v2573_v59, %v3618_v31 }
 0x2b8   : > { %v1142_v56 = vpop.f32.mrf.mxu0 }
 0x2b9   : > { %v1205_v18 = vadd.f32 %v3618_v31, %v1142_v56 }
 0x2be   : > { %v2588_v52 = vpop.f32.mrf.mxu1 }
 0x2bf   : > { %v3639_v53 = vadd.f32 %v2588_v52, %v3618_v31 }
 0x2c0   : > { %v1192_v54 = vpop.f32.mrf.mxu1 }
 0x2c1   : > { %v3642_v44 = vadd.f32 %v3618_v31, %v1192_v54 }
 0x2c3   : > { %v2576_v61 = vpop.f32.mrf.mxu0 }
 0x2c4   : > { %v1208_v55 = vadd.f32 %v2576_v61, %v3618_v31 }
 0x2c5   : > { %v1152_v43 = vpop.f32.mrf.mxu0 }
 0x2c6   : > { %v1207_v62 = vadd.f32 %v3618_v31, %v1152_v43 }
 0x2cb   : > { %v2597_v36 = vpop.f32.mrf.mxu1 }
 0x2cc   : > { %v1625_v1 = vadd.f32 %v2597_v36, %v1202_v46 }
 0x2cd   : > { %v1545_v63 = vpop.f32.mrf.mxu1 }
 0x2ce   : > { %v1624_v4 = vadd.f32 %v1545_v63, %v1201_v0 }
 0x2d6   : > { %v2627_v2 = vpop.f32.mrf.mxu0 }
 0x2d7   : > { %v2048_v47 = vadd.f32 %v2627_v2, %v1625_v1 }
 0x2d8   : > { %v1968_v50 = vpop.f32.mrf.mxu0 }
 0x2d9   : > { %2064 = vst.msk [vmem:[%s2842_s15 + $0x8] sm:$0xff] %vm970_vm10, %v2048_v47  ;;  %v2047_v5 = vadd.f32 %v1968_v50, %v1624_v4 }
 0x2db   : > { %2063 = vst.msk [vmem:[%s2842_s15] sm:$0xff] %vm970_vm10, %v2047_v5  ;;  %v2600_v6 = vpop.f32.mrf.mxu1 }
 0x2dc   : > { %v1627_v11 = vadd.f32 %v2600_v6, %v1204_v8 }
 0x2dd   : > { %v1555_v10 = vpop.f32.mrf.mxu1 }
 0x2de   : > { %v1626_v60 = vadd.f32 %v1555_v10, %v1203_v7 }
 0x2e6   : > { %v2630_v9 = vpop.f32.mrf.mxu0 }
 0x2e7   : > { %v2050_v12 = vadd.f32 %v2630_v9, %v1627_v11 }
 0x2e8   : > { %v1978_v3 = vpop.f32.mrf.mxu0 }
 0x2e9   : > { %2066 = vst.msk [vmem:[%s2842_s15 + $0x18] sm:$0xff] %vm970_vm10, %v2050_v12  ;;  %v2049_v13 = vadd.f32 %v1978_v3, %v1626_v60 }
 0x2eb   : > { %2065 = vst.msk [vmem:[%s2842_s15 + $0x10] sm:$0xff] %vm970_vm10, %v2049_v13  ;;  %v2603_v15 = vpop.f32.mrf.mxu1 }
 0x2ec   : > { %v1629_v19 = vadd.f32 %v2603_v15, %v1206_v16 }
 0x2ed   : > { %v1565_v17 = vpop.f32.mrf.mxu1 }
 0x2ee   : > { %v1628_v22 = vadd.f32 %v1565_v17, %v1205_v18 }
 0x2f6   : > { %v2633_v21 = vpop.f32.mrf.mxu0 }
 0x2f7   : > { %v2052_v23 = vadd.f32 %v2633_v21, %v1629_v19 }
 0x2f8   : > { %v1988_v24 = vpop.f32.mrf.mxu0 }
 0x2f9   : > { %2068 = vst.msk [vmem:[%s2842_s15 + $0x28] sm:$0xff] %vm970_vm10, %v2052_v23  ;;  %v2051_v25 = vadd.f32 %v1988_v24, %v1628_v22 }
 0x2fb   : > { %2067 = vst.msk [vmem:[%s2842_s15 + $0x20] sm:$0xff] %vm970_vm10, %v2051_v25  ;;  %v2606_v27 = vpop.f32.mrf.mxu1 }
 0x2fc   : > { %v1631_v29 = vadd.f32 %v2606_v27, %v1208_v55 }
 0x2fd   : > { %v1575_v28 = vpop.f32.mrf.mxu1 }
 0x2fe   : > { %v1630_v32 = vadd.f32 %v1575_v28, %v1207_v62 }
 0x306   : > { %v2636_v30 = vpop.f32.mrf.mxu0 }
 0x307   : > { %v2054_v26 = vadd.f32 %v2636_v30, %v1631_v29 }
 0x308   : > { %v1998_v33 = vpop.f32.mrf.mxu0 }
 0x309   : > { %2070 = vst.msk [vmem:[%s2842_s15 + $0x38] sm:$0xff] %vm970_vm10, %v2054_v26  ;;  %v2053_v34 = vadd.f32 %v1998_v33, %v1630_v32 }
 0x30b   : > { %2069 = vst.msk [vmem:[%s2842_s15 + $0x30] sm:$0xff] %vm970_vm10, %v2053_v34  ;;  %v2609_v37 = vpop.f32.mrf.mxu1 }
 0x30c   : > { %v1633_v45 = vadd.f32 %v2609_v37, %v3621_v35 }
 0x30d   : > { %v1585_v40 = vpop.f32.mrf.mxu1 }
 0x30e   : > { %v1632_v31 = vadd.f32 %v1585_v40, %v3624_v38 }
 0x316   : > { %v2639_v39 = vpop.f32.mrf.mxu0 }
 0x317   : > { %v2056_v41 = vadd.f32 %v2639_v39, %v1633_v45 }
 0x318   : > { %v2008_v51 = vpop.f32.mrf.mxu0 }
 0x319   : > { %2072 = vst.msk [vmem:[%s2842_s15 + $0x48] sm:$0xff] %vm970_vm10, %v2056_v41  ;;  %v2055_v52 = vadd.f32 %v2008_v51, %v1632_v31 }
 0x31b   : > { %2071 = vst.msk [vmem:[%s2842_s15 + $0x40] sm:$0xff] %vm970_vm10, %v2055_v52  ;;  %v2612_v54 = vpop.f32.mrf.mxu1 }
 0x31c   : > { %v1635_v58 = vadd.f32 %v2612_v54, %v3627_v42 }
 0x31d   : > { %v1595_v57 = vpop.f32.mrf.mxu1 }
 0x31e   : > { %v1634_v35 = vadd.f32 %v1595_v57, %v3630_v14 }
 0x326   : > { %v2642_v49 = vpop.f32.mrf.mxu0 }
 0x327   : > { %v2058_v59 = vadd.f32 %v2642_v49, %v1635_v58 }
 0x328   : > { %v2018_v56 = vpop.f32.mrf.mxu0 }
 0x329   : > { %2074 = vst.msk [vmem:[%s2842_s15 + $0x58] sm:$0xff] %vm970_vm10, %v2058_v59  ;;  %v2057_v38 = vadd.f32 %v2018_v56, %v1634_v35 }
 0x32b   : > { %2073 = vst.msk [vmem:[%s2842_s15 + $0x50] sm:$0xff] %vm970_vm10, %v2057_v38  ;;  %v2615_v61 = vpop.f32.mrf.mxu1 }
 0x32c   : > { %v1637_v46 = vadd.f32 %v2615_v61, %v3633_v20 }
 0x32d   : > { %v1605_v36 = vpop.f32.mrf.mxu1 }
 0x32e   : > { %v1636_v42 = vadd.f32 %v1605_v36, %v3636_v48 }
 0x336   : > { %v2645_v43 = vpop.f32.mrf.mxu0 }
 0x337   : > { %v2060_v63 = vadd.f32 %v2645_v43, %v1637_v46 }
 0x338   : > { %v2028_v0 = vpop.f32.mrf.mxu0 }
 0x339   : > { %2076 = vst.msk [vmem:[%s2842_s15 + $0x68] sm:$0xff] %vm970_vm10, %v2060_v63  ;;  %v2059_v14 = vadd.f32 %v2028_v0, %v1636_v42 }
 0x33b   : > { %2075 = vst.msk [vmem:[%s2842_s15 + $0x60] sm:$0xff] %vm970_vm10, %v2059_v14  ;;  %v2618_v1 = vpop.f32.mrf.mxu1 }
 0x33c   : > { %v1639_v4 = vadd.f32 %v2618_v1, %v3639_v53 }
 0x33d   : > { %v1615_v2 = vpop.f32.mrf.mxu1 }
 0x33e   : > { %v1638_v50 = vadd.f32 %v1615_v2, %v3642_v44 }
 0x343   : > { %v2648_v47 = vpop.f32.mrf.mxu0 }
 0x344   : > { %v2062_v5 = vadd.f32 %v2648_v47, %v1639_v4 }
 0x345   : > { %v2038_v20 = vpop.f32.mrf.mxu0 }
 0x346   : > { %2078 = vst.msk [vmem:[%s2842_s15 + $0x78] sm:$0xff] %vm970_vm10, %v2062_v5  ;;  %v2061_v6 = vadd.f32 %v2038_v20, %v1638_v50 }
 0x348   : > { %2077 = vst.msk [vmem:[%s2842_s15 + $0x70] sm:$0xff] %vm970_vm10, %v2061_v6 }
 0x349 PF: > { %s16_s25 = sadd.s32 1, %s2739_s25   ;;  %s3716_s26 = sld [smem:[#allocation3_spill]] }
 0x34a   : > { %p13_p3 = scmp.ge.s32.totalorder %s16_s25, 8   ;;  %s3717_s9 = sld [smem:[#allocation4_spill]] }
 0x34b   : > { %s3718_s21 = smov %s2731_s23  ;;  %s3719_s22 = smov %s2735_s24 }
 0x34c   :  { %15 = sbr.rel (!%p13_p3) target bundleno = 3 (0x3), region = 112 }
 0x34f   : > { %s3720_s23 = smov %s3716_s26 }
 0x350   : > { %s3721_s24 = smov %s3717_s9 }

</bundles_post_ra>
